<compile_context>
chip_gen: v7x
topology: tpu7x:2x2x1
jax: 0.10.0
libtpu: 0.0.40
codegen_flags: <defaults>
</compile_context>

<pallas_src>
import functools

import numpy as np

import jax
import jax.numpy as jnp
from jax.experimental import pallas as pl
from jax.experimental.pallas import tpu as pltpu

EPS = 1e-6


def _layernorm(y, g, b):
    u = jnp.mean(y, axis=-1, keepdims=True)
    d = y - u
    var = jnp.mean(d * d, axis=-1, keepdims=True)
    return d * jax.lax.rsqrt(var + EPS) * g + b


def _gelu_exact(x):
    # erf via the Abramowitz-Stegun 7.1.26 polynomial (|err| <= 1.5e-7) so the
    # exact (non-tanh) nn.GELU() lowers with only exp/mul/add/where.
    z = x * 0.7071067811865476
    s = jnp.where(z < 0.0, -1.0, 1.0)
    a = jnp.abs(z)
    t = 1.0 / (1.0 + 0.3275911 * a)
    poly = t * (0.254829592 + t * (-0.284496736 + t * (1.421413741
                + t * (-1.453152027 + t * 1.061405429))))
    erf = s * (1.0 - poly * jnp.exp(-a * a))
    return 0.5 * x * (1.0 + erf)


# ----------------------------------------------------------------------------
# Host-side constant 0/1 selection matrices (built once, DMA'd once).
# ----------------------------------------------------------------------------
def _nearest_upsample_matrix(h2, w2, hu, wu):
    """(H2*W2, Hu*Wu) matrix U with U @ up == nearest x2 upsample of up."""
    rows = np.arange(h2 * w2)
    rh, rw = rows // w2, rows % w2
    src = (rh // 2) * wu + (rw // 2)
    return (np.arange(hu * wu)[None, :] == src[:, None]).astype(np.float32)


def _shift_select_matrix(h2, w2, ksize):
    """Concatenated shift/zero-pad matrices [S_0 | ... | S_{k*k-1}].

    S_t[p, q] = 1 iff source position q equals output position p shifted by
    tap t (row-major (kh, kw) order) and the shifted coordinate is in-bounds
    (SAME zero padding otherwise).  Shape: (H2*W2, k*k*H2*W2).
    """
    pad = (ksize - 1) // 2
    hw = h2 * w2
    rows = np.arange(hw)
    rh, rw = rows // w2, rows % w2
    cols = np.arange(hw)
    ch, cw = cols // w2, cols % w2
    mats = []
    for kh in range(ksize):
        for kw in range(ksize):
            sh = rh + (kh - pad)
            sw = rw + (kw - pad)
            valid = (sh >= 0) & (sh < h2) & (sw >= 0) & (sw < w2)
            m = ((ch[None, :] == sh[:, None]) &
                 (cw[None, :] == sw[:, None]) & valid[:, None])
            mats.append(m.astype(np.float32))
    return np.concatenate(mats, axis=1)


# ----------------------------------------------------------------------------
# Single fused kernel: Fusion (down conv + LN, up linear + LN + x2 upsample,
# add) followed by the full ConvNextBlock stack, one image per grid step.
# ----------------------------------------------------------------------------
def _level_kernel(patch_ref, up_ref, upsel_ref, ssel_ref, fw_ref, fv_ref,
                  dw_ref, w1_ref, w2_ref, bv_ref, o_ref,
                  *, cm, cin4, cup, nblk, ktaps):
    f32 = jnp.float32

    # ---------------- Fusion ----------------
    fv = fv_ref[...]                                            # (6, Cm)
    # down: Conv2d(k=2, s=2) on pre-extracted 2x2 patches, then LayerNorm(C)
    down = jnp.dot(patch_ref[0], fw_ref[0:cin4, :],
                   preferred_element_type=f32) + fv[0:1, :]
    down = _layernorm(down, fv[1:2, :], fv[2:3, :])             # (HW, Cm)

    # up: Linear(Cup -> Cm), LayerNorm(C), then nearest x2 upsample as a
    # constant 0/1 gather matrix applied on the MXU.
    up = jnp.dot(up_ref[0], fw_ref[cin4:cin4 + cup, :],
                 preferred_element_type=f32) + fv[3:4, :]
    up = _layernorm(up, fv[4:5, :], fv[5:6, :])                 # (Hu*Wu, Cm)
    x = down + jnp.dot(upsel_ref[...], up, preferred_element_type=f32)

    ssel = ssel_ref[...]                                        # (HW, k*k*HW)

    # ---------------- ConvNextBlock stack ----------------
    for blk in range(nblk):
        dw = dw_ref[blk]                                        # (k*k, Cm)
        bv = bv_ref[blk]                                        # (6, hidden)
        dw_b, ln_g, ln_b = bv[0:1, :cm], bv[1:2, :cm], bv[2:3, :cm]
        b2, gamma, b1 = bv[3:4, :cm], bv[4:5, :cm], bv[5:6, :]

        # Depthwise KxK conv (groups=C, SAME zero pad) as ONE matmul: the
        # per-channel tap weight commutes through the 0/1 gather, so
        #   sum_k S_k @ (x * dw[k])  ==  [S_0|...] @ concat_k(x * dw[k]).
        xk = jnp.concatenate([x * dw[k:k + 1, :] for k in range(ktaps)],
                             axis=0)                            # (k*k*HW, Cm)
        acc = jnp.dot(ssel, xk, preferred_element_type=f32) + dw_b

        # LayerNorm(C) -> Linear(C,4C) -> GELU -> Linear(4C,C) -> layer scale
        y = _layernorm(acc, ln_g, ln_b)
        h = jnp.dot(y, w1_ref[blk], preferred_element_type=f32) + b1
        h = _gelu_exact(h)
        o = jnp.dot(h, w2_ref[blk], preferred_element_type=f32) + b2
        x = x + gamma * o      # residual; DropPath(rate=0.0) == identity

    # channel-major store: wrapper reshape to NCHW is free metadata plumbing.
    o_ref[0] = jnp.transpose(x).astype(o_ref.dtype)


# ----------------------------------------------------------------------------
# Wrapper: NCHW boundary conversion + single fused pallas_call.
# ----------------------------------------------------------------------------
def level_forward(params, c_down, c_up, ksize):
    B, Cin, H, W = c_down.shape
    _, Cup, Hu, Wu = c_up.shape
    Cm = params["fuse_w"].shape[-1]
    hidden = params["blk_v"].shape[-1]
    nblk = params["dw_w"].shape[0]
    H2, W2 = H // 2, W // 2
    HW = H2 * W2
    ktaps = ksize * ksize
    assert (2 * Hu, 2 * Wu) == (H2, W2), "up path must match down path spatially"

    # NCHW -> NHWC; 2x2/stride-2 patch extraction via four cheap strided slices
    # concatenated on the channel axis ((kh, kw, ci) order matches the weight).
    cd = jnp.transpose(c_down, (0, 2, 3, 1))
    patches = jnp.concatenate(
        [cd[:, kh::2, kw::2, :] for kh in (0, 1) for kw in (0, 1)], axis=-1
    ).reshape(B, HW, 4 * Cin)
    cu = jnp.transpose(c_up, (0, 2, 3, 1)).reshape(B, Hu * Wu, Cup)

    # Constant selection matrices (shared by every grid step / block).
    upsel = jnp.asarray(_nearest_upsample_matrix(H2, W2, Hu, Wu))
    ssel = jnp.asarray(_shift_select_matrix(H2, W2, ksize))

    kernel = functools.partial(
        _level_kernel, cm=Cm, cin4=4 * Cin, cup=Cup, nblk=nblk, ktaps=ktaps)

    out = pl.pallas_call(
        kernel,
        grid=(B,),
        in_specs=[
            pl.BlockSpec((1, HW, 4 * Cin), lambda b: (b, 0, 0)),
            pl.BlockSpec((1, Hu * Wu, Cup), lambda b: (b, 0, 0)),
            pl.BlockSpec((HW, Hu * Wu), lambda b: (0, 0)),
            pl.BlockSpec((HW, ktaps * HW), lambda b: (0, 0)),
            pl.BlockSpec((4 * Cin + Cup, Cm), lambda b: (0, 0)),
            pl.BlockSpec((6, Cm), lambda b: (0, 0)),
            pl.BlockSpec((nblk, ktaps, Cm), lambda b: (0, 0, 0)),
            pl.BlockSpec((nblk, Cm, hidden), lambda b: (0, 0, 0)),
            pl.BlockSpec((nblk, hidden, Cm), lambda b: (0, 0, 0)),
            pl.BlockSpec((nblk, 6, hidden), lambda b: (0, 0, 0)),
        ],
        out_specs=pl.BlockSpec((1, Cm, HW), lambda b: (b, 0, 0)),
        out_shape=jax.ShapeDtypeStruct((B, Cm, HW), jnp.float32),
        compiler_params=pltpu.CompilerParams(dimension_semantics=("parallel",)),
    )(patches, cu, upsel, ssel, params["fuse_w"], params["fuse_v"],
      params["dw_w"], params["w1"], params["w2"], params["blk_v"])

    return out.reshape(B, Cm, H2, W2)          # NCHW


# ----------------------------------------------------------------------------
# Deterministic parameter construction (shapes per the PyTorch __init__),
# packed into the concatenated buffers the kernel expects.
# ----------------------------------------------------------------------------
def init_params(key, level, channels, layers, kernel_size):
    Cin, Cm, Cup = channels[level - 1], channels[level], channels[level + 1]
    hidden = 4 * Cm
    nblk = layers[level]
    keys = jax.random.split(key, 4 + 6 * nblk)

    def nrm(k, shape, scale=0.05):
        return scale * jax.random.normal(k, shape, jnp.float32)

    # Fusion.down: Conv2d(Cin, Cm, k=2, s=2) weight OIHW -> (kh,kw,ci) x Cm
    conv_w = nrm(keys[0], (Cm, Cin, 2, 2))
    down_w = jnp.transpose(conv_w, (2, 3, 1, 0)).reshape(4 * Cin, Cm)
    # Fusion.up: Linear(Cup, Cm) torch weight is (out, in) -> transpose
    up_w = jnp.transpose(nrm(keys[1], (Cm, Cup)))
    fuse_w = jnp.concatenate([down_w, up_w], axis=0)            # (4Cin+Cup, Cm)
    fuse_v = jnp.stack([
        nrm(keys[2], (Cm,)),            # down conv bias
        jnp.ones((Cm,), jnp.float32),   # down LN gamma
        jnp.zeros((Cm,), jnp.float32),  # down LN beta
        nrm(keys[3], (Cm,)),            # up linear bias
        jnp.ones((Cm,), jnp.float32),   # up LN gamma
        jnp.zeros((Cm,), jnp.float32),  # up LN beta
    ])                                                           # (6, Cm)

    def pad_row(v):                      # place Cm-wide vector in hidden-wide row
        return jnp.concatenate([v, jnp.zeros((hidden - Cm,), jnp.float32)])

    dw_ws, w1s, w2s, bvs = [], [], [], []
    for i in range(nblk):
        kk = keys[4 + 6 * i: 4 + 6 * (i + 1)]
        # depthwise Conv2d(Cm, Cm, k, groups=Cm) weight (Cm, 1, k, k)
        dw_t = nrm(kk[0], (Cm, 1, kernel_size, kernel_size))
        dw_ws.append(jnp.transpose(dw_t[:, 0], (1, 2, 0)).reshape(
            kernel_size * kernel_size, Cm))
        w1s.append(jnp.transpose(nrm(kk[2], (hidden, Cm))))      # (Cm, hidden)
        w2s.append(jnp.transpose(nrm(kk[4], (Cm, hidden))))      # (hidden, Cm)
        bvs.append(jnp.stack([
            pad_row(nrm(kk[1], (Cm,))),                          # dw conv bias
            pad_row(jnp.ones((Cm,), jnp.float32)),               # LN gamma
            pad_row(jnp.zeros((Cm,), jnp.float32)),              # LN beta
            pad_row(nrm(kk[5], (Cm,))),                          # pwconv2 bias
            pad_row(jnp.full((Cm,), 1e-6, jnp.float32)),         # layer scale
            nrm(kk[3], (hidden,)),                               # pwconv1 bias
        ]))                                                       # (6, hidden)

    return dict(fuse_w=fuse_w, fuse_v=fuse_v,
                dw_w=jnp.stack(dw_ws), w1=jnp.stack(w1s),
                w2=jnp.stack(w2s), blk_v=jnp.stack(bvs))


if __name__ == "__main__":
    level = 1
    channels = [4, 8, 16, 32]
    layers = [1, 1, 1, 1]
    kernel_size = 3

    key = jax.random.PRNGKey(0)
    kp, kd, ku = jax.random.split(key, 3)
    params = init_params(kp, level, channels, layers, kernel_size)

    B, H, W = 2, 16, 16
    c_down = jax.random.normal(kd, (B, channels[level - 1], H, W), jnp.float32)      # (2, 4, 16, 16)
    c_up = jax.random.normal(ku, (B, channels[level + 1], H // 4, W // 4), jnp.float32)  # (2, 16, 4, 4)

    # TODO(synk): DropPath with dp_rate > 0 (training-time stochastic depth) is
    # not modelled; rate 0.0 == identity, matching the module default.
    out = jax.block_until_ready(level_forward(params, c_down, c_up, kernel_size))
    assert out.shape == (B, channels[level], H // 2, W // 2), out.shape
    assert bool(jnp.all(jnp.isfinite(out)))
    print("KERNEL_OK")
</pallas_src>

<mosaic_0001>
module attributes {stable_mosaic.version = 11 : i64} {
  func.func @_level_kernel(%arg0: i32, %arg1: memref<1x64x16xf32, #tpu.memory_space<vmem>>, %arg2: memref<1x16x16xf32, #tpu.memory_space<vmem>>, %arg3: memref<64x16xf32, #tpu.memory_space<vmem>>, %arg4: memref<64x576xf32, #tpu.memory_space<vmem>>, %arg5: memref<32x8xf32, #tpu.memory_space<vmem>>, %arg6: memref<6x8xf32, #tpu.memory_space<vmem>>, %arg7: memref<1x9x8xf32, #tpu.memory_space<vmem>>, %arg8: memref<1x8x32xf32, #tpu.memory_space<vmem>>, %arg9: memref<1x32x8xf32, #tpu.memory_space<vmem>>, %arg10: memref<1x6x32xf32, #tpu.memory_space<vmem>>, %arg11: memref<1x8x64xf32, #tpu.memory_space<vmem>>) attributes {dimension_semantics = [#tpu.dimension_semantics<parallel>], iteration_bounds = array<i64: 2>, scalar_prefetch = 0 : i64, scratch_operands = 0 : i64, tpu.core_type = #tpu.core_type<tc>, window_params = [{transform_indices = @transform_0, window_bounds = array<i64: 1, 64, 16>}, {transform_indices = @transform_1, window_bounds = array<i64: 1, 16, 16>}, {pipeline_mode = #tpu.pipeline_mode<synchronous>, transform_indices = @transform_2, window_bounds = array<i64: 64, 16>}, {pipeline_mode = #tpu.pipeline_mode<synchronous>, transform_indices = @transform_3, window_bounds = array<i64: 64, 576>}, {pipeline_mode = #tpu.pipeline_mode<synchronous>, transform_indices = @transform_4, window_bounds = array<i64: 32, 8>}, {pipeline_mode = #tpu.pipeline_mode<synchronous>, transform_indices = @transform_5, window_bounds = array<i64: 6, 8>}, {pipeline_mode = #tpu.pipeline_mode<synchronous>, transform_indices = @transform_6, window_bounds = array<i64: 1, 9, 8>}, {pipeline_mode = #tpu.pipeline_mode<synchronous>, transform_indices = @transform_7, window_bounds = array<i64: 1, 8, 32>}, {pipeline_mode = #tpu.pipeline_mode<synchronous>, transform_indices = @transform_8, window_bounds = array<i64: 1, 32, 8>}, {pipeline_mode = #tpu.pipeline_mode<synchronous>, transform_indices = @transform_9, window_bounds = array<i64: 1, 6, 32>}, {transform_indices = @transform_10, window_bounds = array<i64: 1, 8, 64>}]} {
    %c0 = arith.constant 0 : index
    %c0_0 = arith.constant 0 : index
    %0 = vector.load %arg6[%c0, %c0_0] : memref<6x8xf32, #tpu.memory_space<vmem>>, vector<6x8xf32>
    %c0_1 = arith.constant 0 : index
    %c0_2 = arith.constant 0 : index
    %c0_3 = arith.constant 0 : index
    %1 = vector.load %arg1[%c0_1, %c0_2, %c0_3] : memref<1x64x16xf32, #tpu.memory_space<vmem>>, vector<1x64x16xf32>
    %2 = vector.shape_cast %1 : vector<1x64x16xf32> to vector<64x16xf32>
    %c0_4 = arith.constant 0 : index
    %c0_5 = arith.constant 0 : index
    %3 = vector.load %arg5[%c0_4, %c0_5] : memref<32x8xf32, #tpu.memory_space<vmem>>, vector<16x8xf32>
    %cst = arith.constant dense<0.000000e+00> : vector<64x8xf32>
    %4 = tpu.matmul %2, %3, %cst {dimension_numbers = #tpu.dot_dimension_numbers<[1], [0], [0], [1], [0, 0, 1, 1], [], []>} : vector<64x16xf32>, vector<16x8xf32>, vector<64x8xf32> -> vector<64x8xf32>
    %5 = vector.extract_strided_slice %0 {offsets = [0, 0], sizes = [1, 8], strides = [1, 1]} : vector<6x8xf32> to vector<1x8xf32>
    %6 = vector.broadcast %5 : vector<1x8xf32> to vector<64x8xf32>
    %7 = arith.addf %4, %6 : vector<64x8xf32>
    %8 = vector.extract_strided_slice %0 {offsets = [1, 0], sizes = [1, 8], strides = [1, 1]} : vector<6x8xf32> to vector<1x8xf32>
    %9 = vector.extract_strided_slice %0 {offsets = [2, 0], sizes = [1, 8], strides = [1, 1]} : vector<6x8xf32> to vector<1x8xf32>
    %cst_6 = arith.constant dense<0.000000e+00> : vector<64xf32>
    %10 = vector.multi_reduction <add>, %7, %cst_6 [1] : vector<64x8xf32> to vector<64xf32>
    %11 = vector.shape_cast %10 : vector<64xf32> to vector<64x1xf32>
    %cst_7 = arith.constant 8.000000e+00 : f32
    %12 = vector.broadcast %cst_7 : f32 to vector<64x1xf32>
    %13 = arith.divf %11, %12 : vector<64x1xf32>
    %14 = vector.broadcast %13 : vector<64x1xf32> to vector<64x8xf32>
    %15 = arith.subf %7, %14 : vector<64x8xf32>
    %16 = arith.mulf %15, %15 : vector<64x8xf32>
    %cst_8 = arith.constant dense<0.000000e+00> : vector<64xf32>
    %17 = vector.multi_reduction <add>, %16, %cst_8 [1] : vector<64x8xf32> to vector<64xf32>
    %18 = vector.shape_cast %17 : vector<64xf32> to vector<64x1xf32>
    %cst_9 = arith.constant 8.000000e+00 : f32
    %19 = vector.broadcast %cst_9 : f32 to vector<64x1xf32>
    %20 = arith.divf %18, %19 : vector<64x1xf32>
    %cst_10 = arith.constant 9.99999997E-7 : f32
    %21 = vector.broadcast %cst_10 : f32 to vector<64x1xf32>
    %22 = arith.addf %20, %21 : vector<64x1xf32>
    %23 = math.rsqrt %22 : vector<64x1xf32>
    %24 = vector.broadcast %23 : vector<64x1xf32> to vector<64x8xf32>
    %25 = arith.mulf %15, %24 : vector<64x8xf32>
    %26 = vector.broadcast %8 : vector<1x8xf32> to vector<64x8xf32>
    %27 = arith.mulf %25, %26 : vector<64x8xf32>
    %28 = vector.broadcast %9 : vector<1x8xf32> to vector<64x8xf32>
    %29 = arith.addf %27, %28 : vector<64x8xf32>
    %c0_11 = arith.constant 0 : index
    %c0_12 = arith.constant 0 : index
    %c0_13 = arith.constant 0 : index
    %30 = vector.load %arg2[%c0_11, %c0_12, %c0_13] : memref<1x16x16xf32, #tpu.memory_space<vmem>>, vector<1x16x16xf32>
    %31 = vector.shape_cast %30 : vector<1x16x16xf32> to vector<16x16xf32>
    %c16 = arith.constant 16 : index
    %c0_14 = arith.constant 0 : index
    %32 = vector.load %arg5[%c16, %c0_14] : memref<32x8xf32, #tpu.memory_space<vmem>>, vector<16x8xf32>
    %cst_15 = arith.constant dense<0.000000e+00> : vector<16x8xf32>
    %33 = tpu.matmul %31, %32, %cst_15 {dimension_numbers = #tpu.dot_dimension_numbers<[1], [0], [0], [1], [0, 0, 1, 1], [], []>} : vector<16x16xf32>, vector<16x8xf32>, vector<16x8xf32> -> vector<16x8xf32>
    %34 = vector.extract_strided_slice %0 {offsets = [3, 0], sizes = [1, 8], strides = [1, 1]} : vector<6x8xf32> to vector<1x8xf32>
    %35 = vector.broadcast %34 : vector<1x8xf32> to vector<16x8xf32>
    %36 = arith.addf %33, %35 : vector<16x8xf32>
    %37 = vector.extract_strided_slice %0 {offsets = [4, 0], sizes = [1, 8], strides = [1, 1]} : vector<6x8xf32> to vector<1x8xf32>
    %38 = vector.extract_strided_slice %0 {offsets = [5, 0], sizes = [1, 8], strides = [1, 1]} : vector<6x8xf32> to vector<1x8xf32>
    %cst_16 = arith.constant dense<0.000000e+00> : vector<16xf32>
    %39 = vector.multi_reduction <add>, %36, %cst_16 [1] : vector<16x8xf32> to vector<16xf32>
    %40 = vector.shape_cast %39 : vector<16xf32> to vector<16x1xf32>
    %cst_17 = arith.constant 8.000000e+00 : f32
    %41 = vector.broadcast %cst_17 : f32 to vector<16x1xf32>
    %42 = arith.divf %40, %41 : vector<16x1xf32>
    %43 = vector.broadcast %42 : vector<16x1xf32> to vector<16x8xf32>
    %44 = arith.subf %36, %43 : vector<16x8xf32>
    %45 = arith.mulf %44, %44 : vector<16x8xf32>
    %cst_18 = arith.constant dense<0.000000e+00> : vector<16xf32>
    %46 = vector.multi_reduction <add>, %45, %cst_18 [1] : vector<16x8xf32> to vector<16xf32>
    %47 = vector.shape_cast %46 : vector<16xf32> to vector<16x1xf32>
    %cst_19 = arith.constant 8.000000e+00 : f32
    %48 = vector.broadcast %cst_19 : f32 to vector<16x1xf32>
    %49 = arith.divf %47, %48 : vector<16x1xf32>
    %cst_20 = arith.constant 9.99999997E-7 : f32
    %50 = vector.broadcast %cst_20 : f32 to vector<16x1xf32>
    %51 = arith.addf %49, %50 : vector<16x1xf32>
    %52 = math.rsqrt %51 : vector<16x1xf32>
    %53 = vector.broadcast %52 : vector<16x1xf32> to vector<16x8xf32>
    %54 = arith.mulf %44, %53 : vector<16x8xf32>
    %55 = vector.broadcast %37 : vector<1x8xf32> to vector<16x8xf32>
    %56 = arith.mulf %54, %55 : vector<16x8xf32>
    %57 = vector.broadcast %38 : vector<1x8xf32> to vector<16x8xf32>
    %58 = arith.addf %56, %57 : vector<16x8xf32>
    %c0_21 = arith.constant 0 : index
    %c0_22 = arith.constant 0 : index
    %59 = vector.load %arg3[%c0_21, %c0_22] : memref<64x16xf32, #tpu.memory_space<vmem>>, vector<64x16xf32>
    %cst_23 = arith.constant dense<0.000000e+00> : vector<64x8xf32>
    %60 = tpu.matmul %59, %58, %cst_23 {dimension_numbers = #tpu.dot_dimension_numbers<[1], [0], [0], [1], [0, 0, 1, 1], [], []>} : vector<64x16xf32>, vector<16x8xf32>, vector<64x8xf32> -> vector<64x8xf32>
    %61 = arith.addf %29, %60 : vector<64x8xf32>
    %c0_24 = arith.constant 0 : index
    %c0_25 = arith.constant 0 : index
    %62 = vector.load %arg4[%c0_24, %c0_25] : memref<64x576xf32, #tpu.memory_space<vmem>>, vector<64x576xf32>
    %c0_26 = arith.constant 0 : index
    %c0_27 = arith.constant 0 : index
    %c0_28 = arith.constant 0 : index
    %63 = vector.load %arg7[%c0_26, %c0_27, %c0_28] : memref<1x9x8xf32, #tpu.memory_space<vmem>>, vector<1x9x8xf32>
    %64 = vector.shape_cast %63 : vector<1x9x8xf32> to vector<9x8xf32>
    %c0_29 = arith.constant 0 : index
    %c0_30 = arith.constant 0 : index
    %c0_31 = arith.constant 0 : index
    %65 = vector.load %arg10[%c0_29, %c0_30, %c0_31] : memref<1x6x32xf32, #tpu.memory_space<vmem>>, vector<1x6x32xf32>
    %66 = vector.shape_cast %65 : vector<1x6x32xf32> to vector<6x32xf32>
    %67 = vector.extract_strided_slice %66 {offsets = [0, 0], sizes = [1, 8], strides = [1, 1]} : vector<6x32xf32> to vector<1x8xf32>
    %68 = vector.extract_strided_slice %66 {offsets = [1, 0], sizes = [1, 8], strides = [1, 1]} : vector<6x32xf32> to vector<1x8xf32>
    %69 = vector.extract_strided_slice %66 {offsets = [2, 0], sizes = [1, 8], strides = [1, 1]} : vector<6x32xf32> to vector<1x8xf32>
    %70 = vector.extract_strided_slice %66 {offsets = [3, 0], sizes = [1, 8], strides = [1, 1]} : vector<6x32xf32> to vector<1x8xf32>
    %71 = vector.extract_strided_slice %66 {offsets = [4, 0], sizes = [1, 8], strides = [1, 1]} : vector<6x32xf32> to vector<1x8xf32>
    %72 = vector.extract_strided_slice %66 {offsets = [5, 0], sizes = [1, 32], strides = [1, 1]} : vector<6x32xf32> to vector<1x32xf32>
    %73 = vector.extract_strided_slice %64 {offsets = [0, 0], sizes = [1, 8], strides = [1, 1]} : vector<9x8xf32> to vector<1x8xf32>
    %74 = vector.broadcast %73 : vector<1x8xf32> to vector<64x8xf32>
    %75 = arith.mulf %61, %74 : vector<64x8xf32>
    %76 = vector.extract_strided_slice %64 {offsets = [1, 0], sizes = [1, 8], strides = [1, 1]} : vector<9x8xf32> to vector<1x8xf32>
    %77 = vector.broadcast %76 : vector<1x8xf32> to vector<64x8xf32>
    %78 = arith.mulf %61, %77 : vector<64x8xf32>
    %79 = vector.extract_strided_slice %64 {offsets = [2, 0], sizes = [1, 8], strides = [1, 1]} : vector<9x8xf32> to vector<1x8xf32>
    %80 = vector.broadcast %79 : vector<1x8xf32> to vector<64x8xf32>
    %81 = arith.mulf %61, %80 : vector<64x8xf32>
    %82 = vector.extract_strided_slice %64 {offsets = [3, 0], sizes = [1, 8], strides = [1, 1]} : vector<9x8xf32> to vector<1x8xf32>
    %83 = vector.broadcast %82 : vector<1x8xf32> to vector<64x8xf32>
    %84 = arith.mulf %61, %83 : vector<64x8xf32>
    %85 = vector.extract_strided_slice %64 {offsets = [4, 0], sizes = [1, 8], strides = [1, 1]} : vector<9x8xf32> to vector<1x8xf32>
    %86 = vector.broadcast %85 : vector<1x8xf32> to vector<64x8xf32>
    %87 = arith.mulf %61, %86 : vector<64x8xf32>
    %88 = vector.extract_strided_slice %64 {offsets = [5, 0], sizes = [1, 8], strides = [1, 1]} : vector<9x8xf32> to vector<1x8xf32>
    %89 = vector.broadcast %88 : vector<1x8xf32> to vector<64x8xf32>
    %90 = arith.mulf %61, %89 : vector<64x8xf32>
    %91 = vector.extract_strided_slice %64 {offsets = [6, 0], sizes = [1, 8], strides = [1, 1]} : vector<9x8xf32> to vector<1x8xf32>
    %92 = vector.broadcast %91 : vector<1x8xf32> to vector<64x8xf32>
    %93 = arith.mulf %61, %92 : vector<64x8xf32>
    %94 = vector.extract_strided_slice %64 {offsets = [7, 0], sizes = [1, 8], strides = [1, 1]} : vector<9x8xf32> to vector<1x8xf32>
    %95 = vector.broadcast %94 : vector<1x8xf32> to vector<64x8xf32>
    %96 = arith.mulf %61, %95 : vector<64x8xf32>
    %97 = vector.extract_strided_slice %64 {offsets = [8, 0], sizes = [1, 8], strides = [1, 1]} : vector<9x8xf32> to vector<1x8xf32>
    %98 = vector.broadcast %97 : vector<1x8xf32> to vector<64x8xf32>
    %99 = arith.mulf %61, %98 : vector<64x8xf32>
    %100 = tpu.concatenate %75, %78, %81, %84, %87, %90, %93, %96, %99 in 0 : vector<64x8xf32>, vector<64x8xf32>, vector<64x8xf32>, vector<64x8xf32>, vector<64x8xf32>, vector<64x8xf32>, vector<64x8xf32>, vector<64x8xf32>, vector<64x8xf32> -> vector<576x8xf32>
    %cst_32 = arith.constant dense<0.000000e+00> : vector<64x8xf32>
    %101 = tpu.matmul %62, %100, %cst_32 {dimension_numbers = #tpu.dot_dimension_numbers<[1], [0], [0], [1], [0, 0, 1, 1], [], []>} : vector<64x576xf32>, vector<576x8xf32>, vector<64x8xf32> -> vector<64x8xf32>
    %102 = vector.broadcast %67 : vector<1x8xf32> to vector<64x8xf32>
    %103 = arith.addf %101, %102 : vector<64x8xf32>
    %cst_33 = arith.constant dense<0.000000e+00> : vector<64xf32>
    %104 = vector.multi_reduction <add>, %103, %cst_33 [1] : vector<64x8xf32> to vector<64xf32>
    %105 = vector.shape_cast %104 : vector<64xf32> to vector<64x1xf32>
    %cst_34 = arith.constant 8.000000e+00 : f32
    %106 = vector.broadcast %cst_34 : f32 to vector<64x1xf32>
    %107 = arith.divf %105, %106 : vector<64x1xf32>
    %108 = vector.broadcast %107 : vector<64x1xf32> to vector<64x8xf32>
    %109 = arith.subf %103, %108 : vector<64x8xf32>
    %110 = arith.mulf %109, %109 : vector<64x8xf32>
    %cst_35 = arith.constant dense<0.000000e+00> : vector<64xf32>
    %111 = vector.multi_reduction <add>, %110, %cst_35 [1] : vector<64x8xf32> to vector<64xf32>
    %112 = vector.shape_cast %111 : vector<64xf32> to vector<64x1xf32>
    %cst_36 = arith.constant 8.000000e+00 : f32
    %113 = vector.broadcast %cst_36 : f32 to vector<64x1xf32>
    %114 = arith.divf %112, %113 : vector<64x1xf32>
    %cst_37 = arith.constant 9.99999997E-7 : f32
    %115 = vector.broadcast %cst_37 : f32 to vector<64x1xf32>
    %116 = arith.addf %114, %115 : vector<64x1xf32>
    %117 = math.rsqrt %116 : vector<64x1xf32>
    %118 = vector.broadcast %117 : vector<64x1xf32> to vector<64x8xf32>
    %119 = arith.mulf %109, %118 : vector<64x8xf32>
    %120 = vector.broadcast %68 : vector<1x8xf32> to vector<64x8xf32>
    %121 = arith.mulf %119, %120 : vector<64x8xf32>
    %122 = vector.broadcast %69 : vector<1x8xf32> to vector<64x8xf32>
    %123 = arith.addf %121, %122 : vector<64x8xf32>
    %c0_38 = arith.constant 0 : index
    %c0_39 = arith.constant 0 : index
    %c0_40 = arith.constant 0 : index
    %124 = vector.load %arg8[%c0_38, %c0_39, %c0_40] : memref<1x8x32xf32, #tpu.memory_space<vmem>>, vector<1x8x32xf32>
    %125 = vector.shape_cast %124 : vector<1x8x32xf32> to vector<8x32xf32>
    %cst_41 = arith.constant dense<0.000000e+00> : vector<64x32xf32>
    %126 = tpu.matmul %123, %125, %cst_41 {dimension_numbers = #tpu.dot_dimension_numbers<[1], [0], [0], [1], [0, 0, 1, 1], [], []>} : vector<64x8xf32>, vector<8x32xf32>, vector<64x32xf32> -> vector<64x32xf32>
    %127 = vector.broadcast %72 : vector<1x32xf32> to vector<64x32xf32>
    %128 = arith.addf %126, %127 : vector<64x32xf32>
    %cst_42 = arith.constant 0.707106769 : f32
    %129 = vector.broadcast %cst_42 : f32 to vector<64x32xf32>
    %130 = arith.mulf %128, %129 : vector<64x32xf32>
    %cst_43 = arith.constant 0.000000e+00 : f32
    %131 = vector.broadcast %cst_43 : f32 to vector<64x32xf32>
    %132 = arith.cmpf olt, %130, %131 : vector<64x32xf32>
    %cst_44 = arith.constant -1.000000e+00 : f32
    %cst_45 = arith.constant 1.000000e+00 : f32
    %133 = vector.broadcast %cst_44 : f32 to vector<64x32xf32>
    %134 = vector.broadcast %cst_45 : f32 to vector<64x32xf32>
    %135 = arith.select %132, %133, %134 : vector<64x32xi1>, vector<64x32xf32>
    %136 = math.absf %130 : vector<64x32xf32>
    %cst_46 = arith.constant 0.327591091 : f32
    %137 = vector.broadcast %cst_46 : f32 to vector<64x32xf32>
    %138 = arith.mulf %137, %136 : vector<64x32xf32>
    %cst_47 = arith.constant 1.000000e+00 : f32
    %139 = vector.broadcast %cst_47 : f32 to vector<64x32xf32>
    %140 = arith.addf %139, %138 : vector<64x32xf32>
    %cst_48 = arith.constant 1.000000e+00 : f32
    %141 = vector.broadcast %cst_48 : f32 to vector<64x32xf32>
    %142 = arith.divf %141, %140 : vector<64x32xf32>
    %cst_49 = arith.constant 1.06140542 : f32
    %143 = vector.broadcast %cst_49 : f32 to vector<64x32xf32>
    %144 = arith.mulf %142, %143 : vector<64x32xf32>
    %cst_50 = arith.constant -1.45315206 : f32
    %145 = vector.broadcast %cst_50 : f32 to vector<64x32xf32>
    %146 = arith.addf %145, %144 : vector<64x32xf32>
    %147 = arith.mulf %142, %146 : vector<64x32xf32>
    %cst_51 = arith.constant 1.42141378 : f32
    %148 = vector.broadcast %cst_51 : f32 to vector<64x32xf32>
    %149 = arith.addf %148, %147 : vector<64x32xf32>
    %150 = arith.mulf %142, %149 : vector<64x32xf32>
    %cst_52 = arith.constant -0.284496725 : f32
    %151 = vector.broadcast %cst_52 : f32 to vector<64x32xf32>
    %152 = arith.addf %151, %150 : vector<64x32xf32>
    %153 = arith.mulf %142, %152 : vector<64x32xf32>
    %cst_53 = arith.constant 0.254829586 : f32
    %154 = vector.broadcast %cst_53 : f32 to vector<64x32xf32>
    %155 = arith.addf %154, %153 : vector<64x32xf32>
    %156 = arith.mulf %142, %155 : vector<64x32xf32>
    %cst_54 = arith.constant 0.000000e+00 : f32
    %157 = vector.broadcast %cst_54 : f32 to vector<64x32xf32>
    %158 = arith.subf %157, %136 : vector<64x32xf32>
    %159 = arith.mulf %158, %136 : vector<64x32xf32>
    %160 = math.exp %159 : vector<64x32xf32>
    %161 = arith.mulf %156, %160 : vector<64x32xf32>
    %cst_55 = arith.constant 1.000000e+00 : f32
    %162 = vector.broadcast %cst_55 : f32 to vector<64x32xf32>
    %163 = arith.subf %162, %161 : vector<64x32xf32>
    %164 = arith.mulf %135, %163 : vector<64x32xf32>
    %cst_56 = arith.constant 5.000000e-01 : f32
    %165 = vector.broadcast %cst_56 : f32 to vector<64x32xf32>
    %166 = arith.mulf %165, %128 : vector<64x32xf32>
    %cst_57 = arith.constant 1.000000e+00 : f32
    %167 = vector.broadcast %cst_57 : f32 to vector<64x32xf32>
    %168 = arith.addf %167, %164 : vector<64x32xf32>
    %169 = arith.mulf %166, %168 : vector<64x32xf32>
    %c0_58 = arith.constant 0 : index
    %c0_59 = arith.constant 0 : index
    %c0_60 = arith.constant 0 : index
    %170 = vector.load %arg9[%c0_58, %c0_59, %c0_60] : memref<1x32x8xf32, #tpu.memory_space<vmem>>, vector<1x32x8xf32>
    %171 = vector.shape_cast %170 : vector<1x32x8xf32> to vector<32x8xf32>
    %cst_61 = arith.constant dense<0.000000e+00> : vector<64x8xf32>
    %172 = tpu.matmul %169, %171, %cst_61 {dimension_numbers = #tpu.dot_dimension_numbers<[1], [0], [0], [1], [0, 0, 1, 1], [], []>} : vector<64x32xf32>, vector<32x8xf32>, vector<64x8xf32> -> vector<64x8xf32>
    %173 = vector.broadcast %70 : vector<1x8xf32> to vector<64x8xf32>
    %174 = arith.addf %172, %173 : vector<64x8xf32>
    %175 = vector.broadcast %71 : vector<1x8xf32> to vector<64x8xf32>
    %176 = arith.mulf %175, %174 : vector<64x8xf32>
    %177 = arith.addf %61, %176 : vector<64x8xf32>
    %178 = tpu.transpose %177, [1, 0] : vector<64x8xf32> -> vector<8x64xf32>
    %c0_62 = arith.constant 0 : index
    %c0_63 = arith.constant 0 : index
    %c0_64 = arith.constant 0 : index
    %179 = vector.load %arg11[%c0_62, %c0_63, %c0_64] : memref<1x8x64xf32, #tpu.memory_space<vmem>>, vector<1x8x64xf32>
    %180 = vector.shape_cast %179 : vector<1x8x64xf32> to vector<8x64xf32>
    %181 = vector.shape_cast %178 : vector<8x64xf32> to vector<1x8x64xf32>
    tpu.vector_store %arg11[%c0_62, %c0_63, %c0_64], %181 {strides = array<i32>} : memref<1x8x64xf32, #tpu.memory_space<vmem>>, vector<1x8x64xf32>,
    return
  }
  func.func @transform_0(%arg0: i32) -> (i32, i32, i32) {
    %c0_i32 = arith.constant 0 : i32
    %c0_i32_0 = arith.constant 0 : i32
    %c0_i32_1 = arith.constant 0 : i32
    return %arg0, %c0_i32, %c0_i32_0 : i32, i32, i32
  }
  func.func @transform_1(%arg0: i32) -> (i32, i32, i32) {
    %c0_i32 = arith.constant 0 : i32
    %c0_i32_0 = arith.constant 0 : i32
    %c0_i32_1 = arith.constant 0 : i32
    return %arg0, %c0_i32, %c0_i32_0 : i32, i32, i32
  }
  func.func @transform_2(%arg0: i32) -> (i32, i32) {
    %c0_i32 = arith.constant 0 : i32
    %c0_i32_0 = arith.constant 0 : i32
    %c0_i32_1 = arith.constant 0 : i32
    return %c0_i32, %c0_i32_0 : i32, i32
  }
  func.func @transform_3(%arg0: i32) -> (i32, i32) {
    %c0_i32 = arith.constant 0 : i32
    %c0_i32_0 = arith.constant 0 : i32
    %c0_i32_1 = arith.constant 0 : i32
    return %c0_i32, %c0_i32_0 : i32, i32
  }
  func.func @transform_4(%arg0: i32) -> (i32, i32) {
    %c0_i32 = arith.constant 0 : i32
    %c0_i32_0 = arith.constant 0 : i32
    %c0_i32_1 = arith.constant 0 : i32
    return %c0_i32, %c0_i32_0 : i32, i32
  }
  func.func @transform_5(%arg0: i32) -> (i32, i32) {
    %c0_i32 = arith.constant 0 : i32
    %c0_i32_0 = arith.constant 0 : i32
    %c0_i32_1 = arith.constant 0 : i32
    return %c0_i32, %c0_i32_0 : i32, i32
  }
  func.func @transform_6(%arg0: i32) -> (i32, i32, i32) {
    %c0_i32 = arith.constant 0 : i32
    %c0_i32_0 = arith.constant 0 : i32
    %c0_i32_1 = arith.constant 0 : i32
    %c0_i32_2 = arith.constant 0 : i32
    return %c0_i32, %c0_i32_0, %c0_i32_1 : i32, i32, i32
  }
  func.func @transform_7(%arg0: i32) -> (i32, i32, i32) {
    %c0_i32 = arith.constant 0 : i32
    %c0_i32_0 = arith.constant 0 : i32
    %c0_i32_1 = arith.constant 0 : i32
    %c0_i32_2 = arith.constant 0 : i32
    return %c0_i32, %c0_i32_0, %c0_i32_1 : i32, i32, i32
  }
  func.func @transform_8(%arg0: i32) -> (i32, i32, i32) {
    %c0_i32 = arith.constant 0 : i32
    %c0_i32_0 = arith.constant 0 : i32
    %c0_i32_1 = arith.constant 0 : i32
    %c0_i32_2 = arith.constant 0 : i32
    return %c0_i32, %c0_i32_0, %c0_i32_1 : i32, i32, i32
  }
  func.func @transform_9(%arg0: i32) -> (i32, i32, i32) {
    %c0_i32 = arith.constant 0 : i32
    %c0_i32_0 = arith.constant 0 : i32
    %c0_i32_1 = arith.constant 0 : i32
    %c0_i32_2 = arith.constant 0 : i32
    return %c0_i32, %c0_i32_0, %c0_i32_1 : i32, i32, i32
  }
  func.func @transform_10(%arg0: i32) -> (i32, i32, i32) {
    %c0_i32 = arith.constant 0 : i32
    %c0_i32_0 = arith.constant 0 : i32
    %c0_i32_1 = arith.constant 0 : i32
    return %arg0, %c0_i32, %c0_i32_0 : i32, i32, i32
  }
}

</mosaic_0001>

<bundles_post_ra>
// kernel: tpu_custom_call.1
= control target key start
LH: loop header
LB: loop body
LE: loop exit
PB: predicated region body
PF: predicated region fallthrough
CT: control target
= control target key end

     0   :  { %15 = vsyncpa [#allocation3], 0  ;;  %s3711_s0 = inlined_call_operand.vmem [shape: f32[2,64,16], index: 0, kind: input, shape index: {}]   ;;  %s3712_s1 = inlined_call_operand.vmem [shape: f32[2,16,16], index: 1, kind: input, shape index: {}]   ;;  %s3713_s2 = inlined_call_operand.vmem [shape: f32[64,16], index: 2, kind: input, shape index: {}]   ;;  %s3714_s3 = inlined_call_operand.vmem [shape: f32[64,576], index: 3, kind: input, shape index: {}]   ;;  %s3715_s4 = inlined_call_operand.vmem [shape: f32[32,8], index: 4, kind: input, shape index: {}]   ;;  %s3716_s5 = inlined_call_operand.vmem [shape: f32[6,8], index: 5, kind: input, shape index: {}]   ;;  %s3717_s6 = inlined_call_operand.vmem [shape: f32[1,9,8], index: 6, kind: input, shape index: {}]   ;;  %s3718_s7 = inlined_call_operand.vmem [shape: f32[1,8,32], index: 7, kind: input, shape index: {}]   ;;  %s3719_s8 = inlined_call_operand.vmem [shape: f32[1,32,8], index: 8, kind: input, shape index: {}]   ;;  %s3720_s9 = inlined_call_operand.vmem [shape: f32[1,6,32], index: 9, kind: input, shape index: {}]   ;;  %s3721_s10 = inlined_call_operand.hbm [shape: f32[2,8,64], index: 10, kind: output, shape index: {}]  }
   0x1   :  { %17 = vsyncpa [#allocation3 + $0x1], 0  ;;  %s2844_s13 = smov 0   ;;  %s2846_s14 = smov 0  }
   0x2   :  { %s2848_s15 = smov 0   ;;  %s2850_s16 = smov 0  }
   0x3 LB: > { %s2865_s17 = sadd.s32 4294967295, %s2785_s16   ;;  %s2174_s18 = sadd.s32 4294967294, %s2785_s16   ;;  %s2785_s16 = sphi %s2850_s16, %s3727_s16   ;;  %s2781_s15 = sphi %s2848_s15, %s3726_s15   ;;  %s2777_s14 = sphi %s2846_s14, %s3725_s14   ;;  %s2773_s13 = sphi %s2844_s13, %s3724_s13  }
   0x4   : > { %s2869_s19 = sadd.s32 1, %s2785_s16   ;;  %s250_s20 = sadd.s32 1, %s2781_s15 }
   0x5   : > { %s247_s21 = ssub.s32 %s2785_s16, %s2869_s19  ;;  %p260_p0 = scmp.ne.s32.totalorder %s2781_s15, %s2777_s14 }
   0x6   : > { %p248_p1 = scmp.eq.s32.totalorder %s247_s21, 0  ;;  %p261_p2 = scmp.eq.s32.totalorder %s2865_s17, 1 }
   0x7   : > { %p266_p3 = scmp.ne.s32.totalorder %s2777_s14, %s2773_s13  ;;  %p267_p4 = scmp.eq.s32.totalorder %s2174_s18, 1 }
   0x8   : > { %s2880_s22 = scalar_select %p248_p1, %s2781_s15, %s250_s20  }
   0x9   : > { %p2882_p5 = por %p261_p2, %p260_p0  ;;  %p2886_p6 = por %p267_p4, %p266_p3 }
   0xa   : > { %p2177_p7 = scmp.ge.s32.totalorder %s2785_s16, 1  ;;  %p325_p8 = scmp.lt.s32.totalorder %s2785_s16, 3 }
   0xc   : > { %p326_p9 = pnand %p2177_p7, %p325_p8 }
   0xd   : > { %v655_v0 = vld [vmem:[%s3715_s4 + $0x10] sm:$0xff] (!%p326_p9)  ;;  %v656_v1 = vld [vmem:[%s3715_s4 + $0x18] sm:$0xff] (!%p326_p9)  ;;  %p368_p10 = scmp.lt.s32.totalorder (!%p326_p9), %s2865_s17, 1  ;;  %v387_v2 = vld [vmem:[%s3715_s4] sm:$0xff] (!%p326_p9)  ;;  %vm393_vm0 = vcmask (!%p326_p9), 130048   ;;  %v389_v16 = vlaneseq (!%p326_p9)  ;;  %vm523_vm1 = vcmask (!%p326_p9), 64512  }
   0xe   : > { %329 = sbr.rel (%p326_p9) target bundleno = 2002 (0x7d2), region = 60  ;;  %v2510_v3 = vpack.c.bf16 (!%p326_p9), %v656_v1, %v655_v0  ;;  %v388_v4 = vld [vmem:[%s3715_s4 + $0x8] sm:$0xff] (!%p326_p9)  ;;  %v2930_v19 = vld [vmem:[%s3716_s5] sm:$0x3f] (!%p326_p9)  ;;  %vm1080_vm2 = vcmask (!%p326_p9), 523264   ;;  %vm1906_vm7 = vcmask (!%p326_p9), 261120  }
   0xf   : > { %v2506_v5 = vpack.c.bf16 (!%p326_p9), %v388_v4, %v387_v2  ;;  %v2922_v17 = vshrl.u32 (!%p326_p9), %v389_v16, 7  ;;  %s2227_s26 = sshll.u32 (!%p326_p9), %s2865_s17, 7 }
  0x10   : > { %2511 = vmatprep.subr.bf16.mxu1 (!%p326_p9), %v2510_v3  ;;  %s3668_s11 = scalar_lea.hbm (!%p326_p9), %s3721_s10, %s2227_s26 }
  0x11   : > { %2513 = vmatpush3.bf16.msra.mxu1 (!%p326_p9), %v2510_v3  ;;  %2507 = vmatprep.subr.bf16.mxu0 (!%p326_p9), %v2506_v5  ;;  %v2925_v18 = vsub.s32 (!%p326_p9), 3, %v2922_v17  ;;  %v2933_v20 = vsub.s32 (!%p326_p9), 0, %v2922_v17 }
  0x12   : > { %2509 = vmatpush3.bf16.msra.mxu0 (!%p326_p9), %v2506_v5 }
  0x13   : > { %v660_v21 = vrot.slane (!%p326_p9), %v2930_v19, %v2925_v18  ;;  %v392_v22 = vrot.slane (!%p326_p9), %v2930_v19, %v2933_v20 }
  0x15   : > { %s369_s18 = scalar_select %p368_p10, %s2865_s17, 1 }
  0x16   : > { %s2788_s17 = smov [#allocation2]  }
  0x17   : > { %s2230_s20 = sshll.u32 %s369_s18, 6  ;;  %s2231_s21 = sshll.u32 %s369_s18, 4 }
  0x18   : > { %s372_s27 = scalar_lea.vmem %s3711_s0, %s2230_s20  ;;  %s377_s30 = scalar_lea.vmem %s3712_s1, %s2231_s21 }
  0x19   : > { %v653_v6 = vld [vmem:[%s377_s30] sm:$0xff]  ;;  %v654_v7 = vld [vmem:[%s377_s30 + $0x8] sm:$0xff]  ;;  %v381_v10 = vld [vmem:[%s372_s27 + $0x10] sm:$0xff]  ;;  %s365_s21 = sand.u32 1, %s2777_s14   ;;  %s2727_s20 = sshll.u32 %s2788_s17, 4  ;;  %s2728_s20 = int_to_ptr.vmem [resolvable:$false] %s2727_s20 }
  0x1a   : > { %v379_v8 = vld [vmem:[%s372_s27] sm:$0xff]  ;;  %2425 = vmatprep.mubr.msk.f32.mxu1 %vm393_vm0, %v653_v6  ;;  %v380_v9 = vld [vmem:[%s372_s27 + $0x8] sm:$0xff]  ;;  %v382_v11 = vld [vmem:[%s372_s27 + $0x18] sm:$0xff]  ;;  %s2178_s25 = sshll.u32 %s365_s21, 3  ;;  %s2090_s12 = scalar_lea.sflag [#allocation3], %s365_s21 }
  0x1b   : > { %2409 = vmatprep.mubr.msk.f32.mxu0 %vm393_vm0, %v379_v8  ;;  %2426 = vmatmul.mubr.msk.f32.vlgmr.msra.gmra.mrb[0].mxu1 %vm393_vm0, %v654_v7  ;;  %v383_v12 = vld [vmem:[%s372_s27 + $0x20] sm:$0xff]  ;;  %v384_v13 = vld [vmem:[%s372_s27 + $0x28] sm:$0xff]  ;;  %v385_v14 = vld [vmem:[%s372_s27 + $0x30] sm:$0xff] }
  0x1c   : > { %2410 = vmatmul.mubr.msk.f32.vlgmr.msra.gmra.mrb[0].mxu0 %vm393_vm0, %v380_v9  ;;  %v386_v15 = vld [vmem:[%s372_s27 + $0x38] sm:$0xff]  ;;  %s367_s27 = scalar_lea.vmem [#allocation2], %s2178_s25  ;;  %s2729_s25 = scalar_lea.vmem %s2728_s20, 256 }
  0x1d   : > { %2412 = vmatprep.mubr.msk.f32.mxu0 %vm393_vm0, %v381_v10  ;;  %s2103_s28 = sshll.u32 %s367_s27, 4  ;;  %s3670_s28 = int_to_ptr.vmem [resolvable:$true] %s2103_s28 }
  0x1e   : > { %s2723_s18 = scalar_lea.vmem %s3670_s28, 128  ;;  %p2730_p0 = scmp.lt.s32.totalorder %s3670_s28, %s2728_s20 }
  0x1f   : > { %p2724_p11 = scmp.ne.s32.totalorder %s3670_s28, %s2723_s18  ;;  %p2731_p1 = scmp.lt.s32.totalorder %s2729_s25, %s2723_s18 }
  0x20   : > { %2413 = vmatmul.mubr.msk.f32.gmra.mrb[2].mxu0 %vm393_vm0, %v382_v11 }
  0x21   : > { %2415 = vmatprep.mubr.msk.f32.mxu0 %vm393_vm0, %v383_v12  ;;  %p2725_p12 = pnand %p2724_p11, %p2882_p5  ;;  %p2732_p2 = por %p2731_p1, %p2730_p0 }
  0x23   : > { %p2726_p13 = pneg %p2725_p12 }
  0x24   : > { %2416 = vmatmul.mubr.msk.f32.gmra.mrb[4].mxu0 %vm393_vm0, %v384_v13 }
  0x25   : > { %2418 = vmatprep.mubr.msk.f32.mxu0 %vm393_vm0, %v385_v14  ;;  %p2733_p3 = pnand %p2732_p2, %p2726_p13 }
  0x28   : > { %2419 = vmatmul.mubr.msk.f32.gmra.mrb[6].mxu0 %vm393_vm0, %v386_v15 }
  0xee   : > { %v2427_v23 = vpop.f32.mrb[0].mxu1 }
  0xef   : > { %v2411_v24 = vpop.f32.mrb[0].mxu0  ;;  %v733_v25 = vpop.f32.mrb[1].mxu1  ;;  %v739_v29 = vadd.f32 %v2427_v23, %v660_v21  ;;  %v780_v23 = vld [vmem:[%s3713_s2] sm:$0xff] }
  0xf0   : > { %v2939_v26 = vadd.f32 %v2411_v24, %v392_v22  ;;  %v484_v27 = vpop.f32.mrb[1].mxu0  ;;  %v734_v28 = vadd.f32 %v733_v25, %v660_v21  ;;  %2432 = vmatprep.mubr.msk.f32.mxu1 %vm393_vm0, %v780_v23 }
  0xf1   : > { %v485_v34 = vadd.f32 %v484_v27, %v392_v22  ;;  %v745_v35 = vsel %vm523_vm1, %v739_v29, 0.0 }
  0xf2   : > { %v742_v30 = vsel %vm523_vm1, %v734_v28, 0.0  ;;  %v527_v0 = vsel %vm523_vm1, %v2939_v26, 0.0 }
  0xf3   : > { %v2414_v31 = vpop.f32.mrb[2].mxu0  ;;  %743 = vadd.xlane.f32.xlu0 %v742_v30  ;;  %v524_v40 = vsel %vm523_vm1, %v485_v34, 0.0 }
  0xf4   : > { %v2942_v32 = vadd.f32 %v2414_v31, %v392_v22  ;;  %v494_v33 = vpop.f32.mrb[3].mxu0 }
  0xf5   : > { %v495_v39 = vadd.f32 %v494_v33, %v392_v22 }
  0xf6   : > { %v533_v6 = vsel %vm523_vm1, %v2942_v32, 0.0 }
  0xf7   : > { %v2417_v36 = vpop.f32.mrb[4].mxu0  ;;  %746 = vadd.xlane.f32.xlu0 %v745_v35  ;;  %v530_v45 = vsel %vm523_vm1, %v495_v39, 0.0 }
  0xf8   : > { %v2945_v37 = vadd.f32 %v2417_v36, %v392_v22  ;;  %v504_v38 = vpop.f32.mrb[5].mxu0  ;;  %v2999_v36 = vsub.s32 4, %v2922_v17 }
  0xf9   : > { %v505_v44 = vadd.f32 %v504_v38, %v392_v22 }
  0xfa   : > { %v539_v12 = vsel %vm523_vm1, %v2945_v37, 0.0 }
  0xfb   : > { %v2420_v41 = vpop.f32.mrb[6].mxu0  ;;  %525 = vadd.xlane.f32.xlu0 %v524_v40  ;;  %v536_v47 = vsel %vm523_vm1, %v505_v44, 0.0 }
  0xfc   : > { %v2948_v42 = vadd.f32 %v2420_v41, %v392_v22  ;;  %v514_v43 = vpop.f32.mrb[7].mxu0 }
  0xfd   : > { %v515_v46 = vadd.f32 %v514_v43, %v392_v22 }
  0xfe   : > { %v545_v16 = vsel %vm523_vm1, %v2948_v42, 0.0 }
  0xff   : > { %531 = vadd.xlane.f32.xlu0 %v530_v45  ;;  %v542_v48 = vsel %vm523_vm1, %v515_v46, 0.0 }
 0x103   : > { %537 = vadd.xlane.f32.xlu0 %v536_v47 }
 0x107   : > { %543 = vadd.xlane.f32.xlu0 %v542_v48 }
 0x180   : > { %v744_v49 = vpop.xlane.xlu0 %743 }
 0x181   : > { %v748_v50 = vmul.f32 0.125, %v744_v49 }
 0x183   : > { %v2953_v51 = vsub.f32 %v734_v28, %v748_v50 }
 0x184   : > { %v747_v52 = vpop.xlane.xlu0 %746 }
 0x185   : > { %v749_v53 = vmul.f32 0.125, %v747_v52  ;;  %v752_v54 = vmul.f32 %v2953_v51, %v2953_v51 }
 0x187   : > { %v2957_v55 = vsub.f32 %v739_v29, %v749_v53  ;;  %v754_v56 = vsel %vm523_vm1, %v752_v54, 0.0 }
 0x188   : > { %755 = vadd.xlane.f32.xlu1 %v754_v56  ;;  %v526_v57 = vpop.xlane.xlu0 %525 }
 0x189   : > { %v549_v58 = vmul.f32 0.125, %v526_v57  ;;  %v753_v59 = vmul.f32 %v2957_v55, %v2957_v55 }
 0x18b   : > { %v2962_v60 = vsub.f32 %v485_v34, %v549_v58  ;;  %v757_v61 = vsel %vm523_vm1, %v753_v59, 0.0 }
 0x18c   : > { %758 = vadd.xlane.f32.xlu1 %v757_v61  ;;  %v532_v62 = vpop.xlane.xlu0 %531 }
 0x18d   : > { %v551_v63 = vmul.f32 0.125, %v532_v62  ;;  %v565_v1 = vmul.f32 %v2962_v60, %v2962_v60 }
 0x18f   : > { %v2969_v2 = vsub.f32 %v495_v39, %v551_v63  ;;  %v573_v3 = vsel %vm523_vm1, %v565_v1, 0.0  ;;  %v781_v1 = vld [vmem:[%s3713_s2 + $0x8] sm:$0xff] }
 0x190   : > { %528 = vadd.xlane.f32.xlu1 %v527_v0  ;;  %574 = vadd.xlane.f32.xlu0 %v573_v3  ;;  %v538_v4 = vpop.xlane.xlu0 %537  ;;  %v783_v3 = vld [vmem:[%s3713_s2 + $0x18] sm:$0xff] }
 0x191   : > { %v553_v5 = vmul.f32 0.125, %v538_v4  ;;  %v567_v7 = vmul.f32 %v2969_v2, %v2969_v2  ;;  %v784_v4 = vld [vmem:[%s3713_s2 + $0x20] sm:$0xff] }
 0x193   : > { %v2976_v8 = vsub.f32 %v505_v44, %v553_v5  ;;  %v579_v9 = vsel %vm523_vm1, %v567_v7, 0.0  ;;  %v785_v5 = vld [vmem:[%s3713_s2 + $0x28] sm:$0xff]  ;;  %v787_v7 = vld [vmem:[%s3713_s2 + $0x38] sm:$0xff] }
 0x194   : > { %534 = vadd.xlane.f32.xlu1 %v533_v6  ;;  %580 = vadd.xlane.f32.xlu0 %v579_v9  ;;  %v544_v10 = vpop.xlane.xlu0 %543  ;;  %v786_v6 = vld [vmem:[%s3713_s2 + $0x30] sm:$0xff]  ;;  %v926_v9 = vld [vmem:[%s3714_s3 + $0x8] sm:$0xff] }
 0x195   : > { %v555_v11 = vmul.f32 0.125, %v544_v10  ;;  %v569_v13 = vmul.f32 %v2976_v8, %v2976_v8  ;;  %v928_v10 = vld [vmem:[%s3714_s3 + $0x18] sm:$0xff]  ;;  %1169 = vmatprep.mubr.f32.mxu0 %v926_v9 }
 0x197   : > { %v2983_v14 = vsub.f32 %v515_v46, %v555_v11  ;;  %v585_v15 = vsel %vm523_vm1, %v569_v13, 0.0  ;;  %v3011_v46 = vsub.s32 5, %v2922_v17 }
 0x198   : > { %540 = vadd.xlane.f32.xlu1 %v539_v12  ;;  %586 = vadd.xlane.f32.xlu0 %v585_v15 }
 0x199   : > { %v571_v21 = vmul.f32 %v2983_v14, %v2983_v14  ;;  %v777_v54 = vrot.slane %v2930_v19, %v3011_v46 }
 0x19b   : > { %v591_v22 = vsel %vm523_vm1, %v571_v21, 0.0 }
 0x19c   : > { %546 = vadd.xlane.f32.xlu1 %v545_v16  ;;  %592 = vadd.xlane.f32.xlu0 %v591_v22 }
 0x215   : > { %v756_v24 = vpop.xlane.xlu1 %755 }
 0x216   : > { %v760_v25 = vmul.f32 0.125, %v756_v24 }
 0x218   : > { %v762_v27 = vadd.f32 1e-06, %v760_v25 }
 0x219   : > { %v759_v28 = vpop.xlane.xlu1 %758 }
 0x21a   : > { %2655 = vrsqrt.f32 %v762_v27  ;;  %v761_v29 = vmul.f32 0.125, %v759_v28 }
 0x21c   : > { %v763_v30 = vadd.f32 1e-06, %v761_v29 }
 0x21d   : > { %v529_v31 = vpop.xlane.xlu1 %528  ;;  %v575_v11 = vpop.xlane.xlu0 %574 }
 0x21e   : > { %2657 = vrsqrt.f32 %v763_v30  ;;  %v550_v33 = vmul.f32 0.125, %v529_v31  ;;  %v597_v22 = vmul.f32 0.125, %v575_v11 }
 0x220   : > { %v2996_v34 = vsub.f32 %v2939_v26, %v550_v33  ;;  %v771_v26 = vrot.slane %v2930_v19, %v2999_v36  ;;  %v605_v28 = vadd.f32 1e-06, %v597_v22 }
 0x221   : > { %v535_v35 = vpop.xlane.xlu1 %534  ;;  %v581_v13 = vpop.xlane.xlu0 %580 }
 0x222   : > { %v552_v38 = vmul.f32 0.125, %v535_v35  ;;  %v566_v39 = vmul.f32 %v2996_v34, %v2996_v34  ;;  %v599_v24 = vmul.f32 0.125, %v581_v13  ;;  %2659 = vrsqrt.f32 %v605_v28 }
 0x224   : > { %v2656_v40 = vpop.eup %2655  ;;  %v3004_v41 = vsub.f32 %v2942_v32, %v552_v38  ;;  %v576_v43 = vsel %vm523_vm1, %v566_v39, 0.0  ;;  %v607_v31 = vadd.f32 1e-06, %v599_v24 }
 0x225   : > { %v541_v44 = vpop.xlane.xlu1 %540  ;;  %577 = vadd.xlane.f32.xlu1 %v576_v43  ;;  %v766_v45 = vmul.f32 %v2656_v40, %v2953_v51  ;;  %v587_v16 = vpop.xlane.xlu0 %586 }
 0x226   : > { %v554_v47 = vmul.f32 0.125, %v541_v44  ;;  %v568_v48 = vmul.f32 %v3004_v41, %v3004_v41  ;;  %v601_v25 = vmul.f32 0.125, %v587_v16  ;;  %2661 = vrsqrt.f32 %v607_v31 }
 0x227   : > { %v772_v53 = vmul.f32 %v771_v26, %v766_v45 }
 0x228   : > { %v2658_v49 = vpop.eup %2657  ;;  %v3016_v32 = vsub.f32 %v2945_v37, %v554_v47  ;;  %v582_v50 = vsel %vm523_vm1, %v568_v48, 0.0  ;;  %v609_v35 = vadd.f32 1e-06, %v601_v25 }
 0x229   : > { %583 = vadd.xlane.f32.xlu1 %v582_v50  ;;  %v547_v52 = vpop.xlane.xlu1 %546  ;;  %v767_v51 = vmul.f32 %v2658_v49, %v2957_v55  ;;  %v778_v61 = vadd.f32 %v777_v54, %v772_v53  ;;  %v593_v23 = vpop.xlane.xlu0 %592 }
 0x22a   : > { %v556_v56 = vmul.f32 0.125, %v547_v52  ;;  %v570_v57 = vmul.f32 %v3016_v32, %v3016_v32  ;;  %v603_v27 = vmul.f32 0.125, %v593_v23  ;;  %2663 = vrsqrt.f32 %v609_v35 }
 0x22b   : > { %v773_v58 = vmul.f32 %v771_v26, %v767_v51  ;;  %v3066_v51 = vsub.s32 1, %v2922_v17 }
 0x22c   : > { %v3025_v59 = vsub.f32 %v2948_v42, %v556_v56  ;;  %v588_v37 = vsel %vm523_vm1, %v570_v57, 0.0  ;;  %v782_v42 = vld [vmem:[%s3713_s2 + $0x10] sm:$0xff]  ;;  %v611_v39 = vadd.f32 1e-06, %v603_v27  ;;  %v2660_v47 = vpop.eup %2659 }
 0x22d   : > { %589 = vadd.xlane.f32.xlu1 %v588_v37  ;;  %v779_v62 = vadd.f32 %v777_v54, %v773_v58  ;;  %v632_v58 = vrot.slane %v2930_v19, %v3066_v51  ;;  %v3072_v37 = vsub.s32 2, %v2922_v17 }
 0x22e   : > { %v572_v55 = vmul.f32 %v3025_v59, %v3025_v59  ;;  %2665 = vrsqrt.f32 %v611_v39 }
 0x22f   : > { %v2514_v63 = vpack.c.bf16 %v779_v62, %v778_v61  ;;  %v621_v61 = vmul.f32 %v2660_v47, %v2962_v60  ;;  %v644_v60 = vrot.slane %v2930_v19, %v3072_v37 }
 0x230   : > { %v594_v0 = vsel %vm523_vm1, %v572_v55, 0.0  ;;  %v2662_v48 = vpop.eup %2661 }
 0x231   : > { %2515 = vmatprep.subr.bf16.mxu1 %v2514_v63  ;;  %595 = vadd.xlane.f32.xlu1 %v594_v0  ;;  %v623_v62 = vmul.f32 %v2662_v48, %v2969_v2  ;;  %v965_v0 = vld [vmem:[%s3717_s6] sm:$0xff]  ;;  %v633_v2 = vmul.f32 %v632_v58, %v621_v61 }
 0x232   : > { %2517 = vmatpush3.bf16.msra.mxu1 %v2514_v63  ;;  %v3098_v19 = vrot.slane %v965_v0, %v2999_v36  ;;  %v3103_v13 = vrot.slane %v965_v0, %v2925_v18 }
 0x233   : > { %v645_v16 = vadd.f32 %v644_v60, %v633_v2 }
 0x234   : > { %v2664_v49 = vpop.eup %2663 }
 0x235   : > { %2433 = vmatmul.mubr.msk.f32.vlgmr.msra.gmra.mrb[2].mxu1 %vm393_vm0, %v781_v1  ;;  %v625_v55 = vmul.f32 %v2664_v49, %v2976_v8  ;;  %v635_v8 = vmul.f32 %v632_v58, %v623_v62 }
 0x236   : > { %2435 = vmatprep.mubr.msk.f32.mxu1 %vm393_vm0, %v782_v42 }
 0x238   : > { %v2666_v50 = vpop.eup %2665 }
 0x239   : > { %2436 = vmatmul.mubr.msk.f32.gmra.mrb[4].mxu1 %vm393_vm0, %v783_v3  ;;  %v627_v63 = vmul.f32 %v2666_v50, %v2983_v14  ;;  %v3088_v14 = vrot.slane %v965_v0, %v2933_v20 }
 0x23a   : > { %2438 = vmatprep.mubr.msk.f32.mxu1 %vm393_vm0, %v784_v4  ;;  %v1042_v4 = vsub.s32 6, %v2922_v17 }
 0x23d   : > { %2439 = vmatmul.mubr.msk.f32.gmra.mrb[6].mxu1 %vm393_vm0, %v785_v5  ;;  %v637_v5 = vmul.f32 %v632_v58, %v625_v55 }
 0x23e   : > { %2441 = vmatprep.mubr.msk.f32.mxu1 %vm393_vm0, %v786_v6  ;;  %v639_v6 = vmul.f32 %v632_v58, %v627_v63 }
 0x23f   : > { %v649_v24 = vadd.f32 %v644_v60, %v637_v5 }
 0x240   : > { %v651_v25 = vadd.f32 %v644_v60, %v639_v6 }
 0x241   : > { %2442 = vmatmul.mubr.msk.f32.gmra.mrb[8].mxu1 %vm393_vm0, %v787_v7  ;;  %v1054_v7 = vsub.s32 7, %v2922_v17  ;;  %v3106_v17 = vrot.slane %v965_v0, %v3011_v46 }
 0x242   : > { %1274 = vmatprep.mubr.f32.mxu1 %v928_v10  ;;  %v3095_v10 = vrot.slane %v965_v0, %v3072_v37 }
 0x243   : > { %v3110_v27 = vrot.slane %v965_v0, %v1054_v7 }
 0x2b2   : > { %v578_v12 = vpop.xlane.xlu1 %577 }
 0x2b3   : > { %v598_v29 = vmul.f32 0.125, %v578_v12  ;;  %v3100_v12 = vrot.slane %v965_v0, %v1042_v4 }
 0x2b5   : > { %v606_v43 = vadd.f32 1e-06, %v598_v29 }
 0x2b6   : > { %v584_v15 = vpop.xlane.xlu1 %583 }
 0x2b7   : > { %v600_v33 = vmul.f32 0.125, %v584_v15  ;;  %2667 = vrsqrt.f32 %v606_v43 }
 0x2b9   : > { %v608_v44 = vadd.f32 1e-06, %v600_v33 }
 0x2ba   : > { %v590_v21 = vpop.xlane.xlu1 %589 }
 0x2bb   : > { %v602_v38 = vmul.f32 0.125, %v590_v21  ;;  %2669 = vrsqrt.f32 %v608_v44  ;;  %v647_v21 = vadd.f32 %v644_v60, %v635_v8 }
 0x2bd   : > { %v610_v45 = vadd.f32 1e-06, %v602_v38 }
 0x2be   : > { %v596_v30 = vpop.xlane.xlu1 %595 }
 0x2bf   : > { %v604_v40 = vmul.f32 0.125, %v596_v30  ;;  %2671 = vrsqrt.f32 %v610_v45 }
 0x2c1   : > { %v612_v26 = vadd.f32 1e-06, %v604_v40  ;;  %v2668_v52 = vpop.eup %2667 }
 0x2c2   : > { %v622_v57 = vmul.f32 %v2668_v52, %v2996_v34 }
 0x2c3   : > { %2673 = vrsqrt.f32 %v612_v26 }
 0x2c4   : > { %v634_v3 = vmul.f32 %v632_v58, %v622_v57 }
 0x2c5   : > { %v2670_v53 = vpop.eup %2669 }
 0x2c6   : > { %v624_v34 = vmul.f32 %v2670_v53, %v3004_v41  ;;  %v3092_v41 = vrot.slane %v965_v0, %v3066_v51  ;;  %v646_v11 = vadd.f32 %v644_v60, %v634_v3 }
 0x2c9   : > { %v2672_v54 = vpop.eup %2671 }
 0x2ca   : > { %v626_v1 = vmul.f32 %v2672_v54, %v3016_v32  ;;  %v636_v32 = vmul.f32 %v632_v58, %v624_v34 }
 0x2cc   : > { %v648_v29 = vadd.f32 %v644_v60, %v636_v32 }
 0x2cd   : > { %v2674_v56 = vpop.eup %2673 }
 0x2ce   : > { %v628_v42 = vmul.f32 %v2674_v56, %v3025_v59  ;;  %v638_v59 = vmul.f32 %v632_v58, %v626_v1 }
 0x2d0   : > { %v640_v9 = vmul.f32 %v632_v58, %v628_v42  ;;  %v650_v30 = vadd.f32 %v644_v60, %v638_v59 }
 0x2d2   : > { %v652_v31 = vadd.f32 %v644_v60, %v640_v9 }
 0x308   : > { %v2434_v15 = vpop.f32.mrb[2].mxu1 }
 0x309   : > { %v3108_v22 = vadd.f32 %v2434_v15, %v646_v11  ;;  %v878_v23 = vpop.f32.mrb[3].mxu1 }
 0x30a   : > { %v3112_v28 = vadd.f32 %v878_v23, %v645_v16 }
 0x30b   : > { %v997_v33 = vmul.f32 %v3095_v10, %v3108_v22  ;;  %v1045_v35 = vmul.f32 %v3100_v12, %v3108_v22  ;;  %v973_v38 = vmul.f32 %v3088_v14, %v3108_v22  ;;  %v1021_v39 = vmul.f32 %v3098_v19, %v3108_v22 }
 0x30c   : > { %v2437_v40 = vpop.f32.mrb[4].mxu1  ;;  %v996_v43 = vmul.f32 %v3095_v10, %v3112_v28  ;;  %v1044_v44 = vmul.f32 %v3100_v12, %v3112_v28  ;;  %v972_v45 = vmul.f32 %v3088_v14, %v3112_v28  ;;  %v1020_v26 = vmul.f32 %v3098_v19, %v3112_v28 }
 0x30d   : > { %v3130_v47 = vadd.f32 %v2437_v40, %v648_v29  ;;  %v888_v48 = vpop.f32.mrb[5].mxu1  ;;  %v3134_v49 = vmul.f32 %v3103_v13, %v3112_v28  ;;  %v3138_v50 = vmul.f32 %v3103_v13, %v3108_v22  ;;  %v3142_v52 = vmul.f32 %v3110_v27, %v3112_v28 }
 0x30e   : > { %v3144_v53 = vadd.f32 %v888_v48, %v647_v21  ;;  %v2518_v54 = vpack.c.bf16 %v997_v33, %v996_v43  ;;  %v2550_v56 = vpack.c.bf16 %v1045_v35, %v1044_v44  ;;  %v2520_v57 = vpack.c.bf16 %v973_v38, %v972_v45 }
 0x30f   : > { %v2552_v58 = vpack.c.bf16 %v1021_v39, %v1020_v26  ;;  %v999_v61 = vmul.f32 %v3095_v10, %v3130_v47  ;;  %v1047_v62 = vmul.f32 %v3100_v12, %v3130_v47  ;;  %v975_v55 = vmul.f32 %v3088_v14, %v3130_v47 }
 0x310   : > { %v2440_v63 = vpop.f32.mrb[6].mxu1  ;;  %2519 = vmatprep.subr.bf16.mxu0 %v2518_v54  ;;  %2551 = vmatprep.subr.bf16.mxu1 %v2550_v56  ;;  %v998_v0 = vmul.f32 %v3095_v10, %v3144_v53  ;;  %v1046_v34 = vmul.f32 %v3100_v12, %v3144_v53  ;;  %v974_v1 = vmul.f32 %v3088_v14, %v3144_v53 }
 0x311   : > { %v3158_v42 = vadd.f32 %v2440_v63, %v650_v30  ;;  %v898_v3 = vpop.f32.mrb[7].mxu1  ;;  %2521 = vmatpush3.bf16.msra.mxu0 %v2520_v57  ;;  %2553 = vmatpush3.bf16.msra.mxu1 %v2552_v58  ;;  %v1022_v4 = vmul.f32 %v3098_v19, %v3144_v53  ;;  %v1023_v60 = vmul.f32 %v3098_v19, %v3130_v47 }
 0x312   : > { %v3164_v2 = vadd.f32 %v898_v3, %v649_v24  ;;  %v2522_v8 = vpack.c.bf16 %v999_v61, %v998_v0  ;;  %v2554_v5 = vpack.c.bf16 %v1047_v62, %v1046_v34  ;;  %v2524_v6 = vpack.c.bf16 %v975_v55, %v974_v1 }
 0x313   : > { %v2556_v7 = vpack.c.bf16 %v1023_v60, %v1022_v4  ;;  %v1001_v32 = vmul.f32 %v3095_v10, %v3158_v42  ;;  %v1049_v59 = vmul.f32 %v3100_v12, %v3158_v42  ;;  %v977_v9 = vmul.f32 %v3088_v14, %v3158_v42 }
 0x314   : > { %v2443_v11 = vpop.f32.mrb[8].mxu1  ;;  %2523 = vmatprep.subr.bf16.mxu0 %v2522_v8  ;;  %2555 = vmatprep.subr.bf16.mxu1 %v2554_v5  ;;  %v1000_v15 = vmul.f32 %v3095_v10, %v3164_v2  ;;  %v1048_v16 = vmul.f32 %v3100_v12, %v3164_v2  ;;  %v976_v21 = vmul.f32 %v3088_v14, %v3164_v2 }
 0x315   : > { %v3178_v23 = vadd.f32 %v2443_v11, %v652_v31  ;;  %v908_v24 = vpop.f32.mrb[9].mxu1  ;;  %2525 = vmatpush3.bf16.msra.mxu0 %v2524_v6  ;;  %2557 = vmatpush3.bf16.msra.mxu1 %v2556_v7  ;;  %v1024_v29 = vmul.f32 %v3098_v19, %v3164_v2  ;;  %v1025_v30 = vmul.f32 %v3098_v19, %v3158_v42 }
 0x316   : > { %v3184_v33 = vadd.f32 %v908_v24, %v651_v25  ;;  %v2526_v35 = vpack.c.bf16 %v1001_v32, %v1000_v15  ;;  %v2558_v38 = vpack.c.bf16 %v1049_v59, %v1048_v16  ;;  %v2528_v39 = vpack.c.bf16 %v977_v9, %v976_v21 }
 0x317   : > { %v2560_v40 = vpack.c.bf16 %v1025_v30, %v1024_v29  ;;  %v1003_v43 = vmul.f32 %v3095_v10, %v3178_v23  ;;  %v1051_v31 = vmul.f32 %v3100_v12, %v3178_v23  ;;  %v979_v44 = vmul.f32 %v3088_v14, %v3178_v23 }
 0x318   : > { %2527 = vmatprep.subr.bf16.mxu0 %v2526_v35  ;;  %2559 = vmatprep.subr.bf16.mxu1 %v2558_v38  ;;  %v1002_v45 = vmul.f32 %v3095_v10, %v3184_v33  ;;  %v1050_v25 = vmul.f32 %v3100_v12, %v3184_v33  ;;  %v978_v26 = vmul.f32 %v3088_v14, %v3184_v33 }
 0x319   : > { %2529 = vmatpush3.bf16.msra.mxu0 %v2528_v39  ;;  %2561 = vmatpush3.bf16.msra.mxu1 %v2560_v40  ;;  %v1026_v48 = vmul.f32 %v3098_v19, %v3184_v33  ;;  %v1027_v54 = vmul.f32 %v3098_v19, %v3178_v23  ;;  %v2534_v56 = vpack.c.bf16 %v3138_v50, %v3134_v49 }
 0x31a   : > { %v2530_v57 = vpack.c.bf16 %v1003_v43, %v1002_v45  ;;  %v2562_v58 = vpack.c.bf16 %v1051_v31, %v1050_v25  ;;  %v2532_v10 = vpack.c.bf16 %v979_v44, %v978_v26  ;;  %v1057_v12 = vmul.f32 %v3110_v27, %v3108_v22  ;;  %v2201_v31 = vld [vmem:[%s3717_s6 + $0x8] ss:$0 sm:$0xff] }
 0x31b   : > { %v2564_v61 = vpack.c.bf16 %v1027_v54, %v1026_v48  ;;  %v984_v14 = vmul.f32 %v3092_v41, %v3112_v28  ;;  %v985_v62 = vmul.f32 %v3092_v41, %v3108_v22  ;;  %v1032_v55 = vmul.f32 %v3106_v17, %v3112_v28 }
 0x31c   : > { %2531 = vmatprep.subr.bf16.mxu0 %v2530_v57  ;;  %2563 = vmatprep.subr.bf16.mxu1 %v2562_v58  ;;  %v2566_v19 = vpack.c.bf16 %v1057_v12, %v3142_v52  ;;  %v1033_v49 = vmul.f32 %v3106_v17, %v3108_v22  ;;  %v1010_v50 = vmul.f32 %v3103_v13, %v3144_v53 }
 0x31d   : > { %2533 = vmatpush3.bf16.msra.mxu0 %v2532_v10  ;;  %2565 = vmatpush3.bf16.msra.mxu1 %v2564_v61  ;;  %v2536_v63 = vpack.c.bf16 %v985_v62, %v984_v14  ;;  %v1011_v0 = vmul.f32 %v3103_v13, %v3130_v47  ;;  %v1058_v34 = vmul.f32 %v3110_v27, %v3144_v53  ;;  %v927_v14 = vld [vmem:[%s3714_s3 + $0x10] sm:$0xff] }
 0x31e   : > { %2535 = vmatprep.subr.bf16.mxu0 %v2534_v56  ;;  %2567 = vmatprep.subr.bf16.mxu1 %v2566_v19  ;;  %v2568_v1 = vpack.c.bf16 %v1033_v49, %v1032_v55  ;;  %v1059_v52 = vmul.f32 %v3110_v27, %v3130_v47  ;;  %v986_v3 = vmul.f32 %v3092_v41, %v3144_v53  ;;  %v931_v55 = vld [vmem:[%s3714_s3 + $0x30] sm:$0xff]  ;;  %v933_v19 = vld [vmem:[%s3714_s3 + $0x40] sm:$0xff] }
 0x31f   : > { %v2538_v4 = vpack.c.bf16 %v1011_v0, %v1010_v50  ;;  %v987_v60 = vmul.f32 %v3092_v41, %v3130_v47  ;;  %v1034_v8 = vmul.f32 %v3106_v17, %v3144_v53  ;;  %v1035_v5 = vmul.f32 %v3106_v17, %v3130_v47  ;;  %v932_v0 = vld [vmem:[%s3714_s3 + $0x38] sm:$0xff] }
 0x320   : > { %v2570_v6 = vpack.c.bf16 %v1059_v52, %v1058_v34  ;;  %v1012_v7 = vmul.f32 %v3103_v13, %v3164_v2  ;;  %v1013_v32 = vmul.f32 %v3103_v13, %v3158_v42  ;;  %v1060_v59 = vmul.f32 %v3110_v27, %v3164_v2  ;;  %v938_v52 = vld [vmem:[%s3714_s3 + $0x68] sm:$0xff] }
 0x321   : > { %2537 = vmatpush3.bf16.msra.mxu0 %v2536_v63  ;;  %2569 = vmatpush3.bf16.msra.mxu1 %v2568_v1  ;;  %v2540_v9 = vpack.c.bf16 %v987_v60, %v986_v3  ;;  %v1061_v11 = vmul.f32 %v3110_v27, %v3158_v42  ;;  %v2572_v15 = vpack.c.bf16 %v1035_v5, %v1034_v8  ;;  %v930_v63 = vld [vmem:[%s3714_s3 + $0x28] sm:$0xff]  ;;  %v936_v1 = vld [vmem:[%s3714_s3 + $0x58] sm:$0xff]  ;;  %v935_v60 = vld [vmem:[%s3714_s3 + $0x50] sm:$0xff] }
 0x322   : > { %2539 = vmatprep.subr.bf16.mxu0 %v2538_v4  ;;  %2571 = vmatprep.subr.bf16.mxu1 %v2570_v6  ;;  %v988_v16 = vmul.f32 %v3092_v41, %v3164_v2  ;;  %v989_v21 = vmul.f32 %v3092_v41, %v3158_v42  ;;  %v2542_v24 = vpack.c.bf16 %v1013_v32, %v1012_v7  ;;  %v937_v8 = vld [vmem:[%s3714_s3 + $0x60] sm:$0xff]  ;;  %v943_v7 = vld [vmem:[%s3714_s3 + $0x90] sm:$0xff]  ;;  %v940_v32 = vld [vmem:[%s3714_s3 + $0x78] sm:$0xff] }
 0x323   : > { %v2574_v29 = vpack.c.bf16 %v1061_v11, %v1060_v59  ;;  %v1036_v30 = vmul.f32 %v3106_v17, %v3164_v2  ;;  %v1037_v35 = vmul.f32 %v3106_v17, %v3158_v42  ;;  %v1014_v38 = vmul.f32 %v3103_v13, %v3184_v33  ;;  %v941_v6 = vld [vmem:[%s3714_s3 + $0x80] sm:$0xff]  ;;  %v942_v59 = vld [vmem:[%s3714_s3 + $0x88] sm:$0xff]  ;;  %v948_v11 = vld [vmem:[%s3714_s3 + $0xb8] sm:$0xff] }
 0x324   : > { %v1015_v39 = vmul.f32 %v3103_v13, %v3178_v23  ;;  %v1062_v40 = vmul.f32 %v3110_v27, %v3184_v33  ;;  %v1063_v43 = vmul.f32 %v3110_v27, %v3178_v23  ;;  %v2544_v44 = vpack.c.bf16 %v989_v21, %v988_v16  ;;  %v947_v16 = vld [vmem:[%s3714_s3 + $0xb0] sm:$0xff] }
 0x325   : > { %2541 = vmatpush3.bf16.msra.mxu0 %v2540_v9  ;;  %2573 = vmatpush3.bf16.msra.mxu1 %v2572_v15  ;;  %v2576_v45 = vpack.c.bf16 %v1037_v35, %v1036_v30  ;;  %v990_v25 = vmul.f32 %v3092_v41, %v3184_v33  ;;  %v991_v13 = vmul.f32 %v3092_v41, %v3178_v23  ;;  %v946_v9 = vld [vmem:[%s3714_s3 + $0xa8] sm:$0xff]  ;;  %v945_v15 = vld [vmem:[%s3714_s3 + $0xa0] sm:$0xff]  ;;  %v951_v21 = vld [vmem:[%s3714_s3 + $0xd0] sm:$0xff] }
 0x326   : > { %2543 = vmatprep.subr.bf16.mxu0 %v2542_v24  ;;  %2575 = vmatprep.subr.bf16.mxu1 %v2574_v29  ;;  %v1038_v26 = vmul.f32 %v3106_v17, %v3184_v33  ;;  %v1039_v27 = vmul.f32 %v3106_v17, %v3178_v23  ;;  %v2546_v48 = vpack.c.bf16 %v1015_v39, %v1014_v38  ;;  %v925_v17 = vld [vmem:[%s3714_s3] sm:$0xff]  ;;  %v950_v29 = vld [vmem:[%s3714_s3 + $0xc8] sm:$0xff]  ;;  %v952_v30 = vld [vmem:[%s3714_s3 + $0xd8] sm:$0xff] }
 0x327   : > { %v2578_v54 = vpack.c.bf16 %v1063_v43, %v1062_v40  ;;  %v1068_v56 = vmul.f32 %v2201_v31, %v3112_v28  ;;  %v1069_v57 = vmul.f32 %v2201_v31, %v3108_v22  ;;  %v2548_v58 = vpack.c.bf16 %v991_v13, %v990_v25  ;;  %v953_v24 = vld [vmem:[%s3714_s3 + $0xe0] sm:$0xff]  ;;  %v956_v35 = vld [vmem:[%s3714_s3 + $0xf8] sm:$0xff]  ;;  %v958_v38 = vld [vmem:[%s3714_s3 + $0x108] sm:$0xff] }
 0x328   : > { %v2580_v10 = vpack.c.bf16 %v1039_v27, %v1038_v26  ;;  %v1070_v41 = vmul.f32 %v2201_v31, %v3144_v53  ;;  %v1071_v61 = vmul.f32 %v2201_v31, %v3130_v47  ;;  %v1072_v49 = vmul.f32 %v2201_v31, %v3164_v2  ;;  %v955_v39 = vld [vmem:[%s3714_s3 + $0xf0] sm:$0xff]  ;;  %v957_v40 = vld [vmem:[%s3714_s3 + $0x100] sm:$0xff]  ;;  %v934_v26 = vld [vmem:[%s3714_s3 + $0x48] sm:$0xff] }
 0x329   : > { %2545 = vmatpush3.bf16.msra.mxu0 %v2544_v44  ;;  %2577 = vmatpush3.bf16.msra.mxu1 %v2576_v45  ;;  %v2582_v12 = vpack.c.bf16 %v1069_v57, %v1068_v56  ;;  %v1073_v50 = vmul.f32 %v2201_v31, %v3158_v42  ;;  %v1074_v3 = vmul.f32 %v2201_v31, %v3184_v33  ;;  %v961_v43 = vld [vmem:[%s3714_s3 + $0x120] sm:$0xff]  ;;  %v960_v44 = vld [vmem:[%s3714_s3 + $0x118] sm:$0xff]  ;;  %v962_v45 = vld [vmem:[%s3714_s3 + $0x128] sm:$0xff] }
 0x32a   : > { %2547 = vmatprep.subr.bf16.mxu0 %v2546_v48  ;;  %2579 = vmatprep.subr.bf16.mxu1 %v2578_v54  ;;  %v2586_v62 = vpack.c.bf16 %v1071_v61, %v1070_v41  ;;  %v1075_v4 = vmul.f32 %v2201_v31, %v3178_v23  ;;  %v963_v31 = vld [vmem:[%s3714_s3 + $0x130] sm:$0xff]  ;;  %v929_v25 = vld [vmem:[%s3714_s3 + $0x20] sm:$0xff]  ;;  %v954_v27 = vld [vmem:[%s3714_s3 + $0xe8] sm:$0xff] }
 0x32b   : > { %v2590_v34 = vpack.c.bf16 %v1073_v50, %v1072_v49  ;;  %v949_v13 = vld [vmem:[%s3714_s3 + $0xc0] sm:$0xff]  ;;  %v939_v48 = vld [vmem:[%s3714_s3 + $0x70] sm:$0xff]  ;;  %v944_v56 = vld [vmem:[%s3714_s3 + $0x98] sm:$0xff] }
 0x32c   : > { %v2594_v5 = vpack.c.bf16 %v1075_v4, %v1074_v3  ;;  %v959_v54 = vld [vmem:[%s3714_s3 + $0x110] sm:$0xff]  ;;  %v964_v57 = vld [vmem:[%s3714_s3 + $0x138] sm:$0xff] }
 0x32d   : > { %2549 = vmatpush3.bf16.msra.mxu0 %v2548_v58  ;;  %2581 = vmatpush3.bf16.msra.mxu1 %v2580_v10  ;;  %v3399_v58 = vld [vmem:[%s3720_s9] sm:$0x3f] }
 0x32e   : > { %2583 = vmatprep.subr.bf16.mxu0 %v2582_v12  ;;  %2606 = vmatprep.subr.bf16.mxu1 %v2582_v12  ;;  %v3403_v10 = vrot.slane %v3399_v58, %v2933_v20 }
 0x330   : > { %1170 = vmatmul.mubr.f32.vlgmr.msra.gmra.mrb[8].mxu0 %v925_v17  ;;  %1275 = vmatmul.mubr.f32.vlgmr.msra.gmra.mrb[10].mxu1 %v927_v14 }
 0x331   : > { %2585 = vmatpush3.bf16.msra.mxu0 %v2582_v12  ;;  %2610 = vmatpush3.bf16.msra.mxu1 %v2582_v12 }
 0x332   : > { %2587 = vmatprep.subr.bf16.mxu0 %v2586_v62  ;;  %2607 = vmatprep.subr.bf16.mxu1 %v2586_v62 }
 0x333   : > { %1174 = vmatprep.mubr.f32.mxu0 %v931_v55  ;;  %1279 = vmatprep.mubr.f32.mxu1 %v933_v19 }
 0x334   : > { %1175 = vmatmul.mubr.f32.gmra.mrb[10].mxu0 %v930_v63  ;;  %1280 = vmatmul.mubr.f32.gmra.mrb[12].mxu1 %v932_v0 }
 0x335   : > { %2589 = vmatpush3.bf16.msra.mxu0 %v2586_v62  ;;  %2611 = vmatpush3.bf16.msra.mxu1 %v2586_v62 }
 0x336   : > { %2591 = vmatprep.subr.bf16.mxu0 %v2590_v34  ;;  %2608 = vmatprep.subr.bf16.mxu1 %v2590_v34 }
 0x337   : > { %1179 = vmatprep.mubr.f32.mxu0 %v936_v1  ;;  %1284 = vmatprep.mubr.f32.mxu1 %v938_v52 }
 0x338   : > { %1180 = vmatmul.mubr.f32.gmra.mrb[12].mxu0 %v935_v60  ;;  %1285 = vmatmul.mubr.f32.gmra.mrb[14].mxu1 %v937_v8 }
 0x339   : > { %2593 = vmatpush3.bf16.msra.mxu0 %v2590_v34  ;;  %2612 = vmatpush3.bf16.msra.mxu1 %v2590_v34 }
 0x33a   : > { %2595 = vmatprep.subr.bf16.mxu0 %v2594_v5  ;;  %2609 = vmatprep.subr.bf16.mxu1 %v2594_v5 }
 0x33b   : > { %1184 = vmatprep.mubr.f32.mxu0 %v941_v6  ;;  %1289 = vmatprep.mubr.f32.mxu1 %v943_v7 }
 0x33c   : > { %1185 = vmatmul.mubr.f32.gmra.mrb[14].mxu0 %v940_v32  ;;  %1290 = vmatmul.mubr.f32.gmra.mrb[16].mxu1 %v942_v59 }
 0x33d   : > { %2597 = vmatpush3.bf16.msra.mxu0 %v2594_v5  ;;  %2613 = vmatpush3.bf16.msra.mxu1 %v2594_v5 }
 0x33e   : > { %1189 = vmatprep.mubr.f32.mxu0 %v946_v9  ;;  %1294 = vmatprep.mubr.f32.mxu1 %v948_v11 }
 0x340   : > { %1190 = vmatmul.mubr.f32.gmra.mrb[16].mxu0 %v945_v15  ;;  %1295 = vmatmul.mubr.f32.gmra.mrb[18].mxu1 %v947_v16 }
 0x341   : > { %1194 = vmatprep.mubr.f32.mxu0 %v951_v21  ;;  %1299 = vmatprep.mubr.f32.mxu1 %v953_v24 }
 0x344   : > { %1195 = vmatmul.mubr.f32.gmra.mrb[18].mxu0 %v950_v29  ;;  %1300 = vmatmul.mubr.f32.gmra.mrb[20].mxu1 %v952_v30 }
 0x345   : > { %1199 = vmatprep.mubr.f32.mxu0 %v956_v35  ;;  %1304 = vmatprep.mubr.f32.mxu1 %v958_v38 }
 0x348   : > { %1200 = vmatmul.mubr.f32.gmra.mrb[20].mxu0 %v955_v39  ;;  %1305 = vmatmul.mubr.f32.gmra.mrb[22].mxu1 %v957_v40 }
 0x349   : > { %1204 = vmatprep.mubr.f32.mxu0 %v961_v43  ;;  %1309 = vmatprep.mubr.f32.mxu1 %v963_v31 }
 0x34c   : > { %1205 = vmatmul.mubr.f32.gmra.mrb[22].mxu0 %v960_v44  ;;  %1310 = vmatmul.mubr.f32.gmra.mrb[24].mxu1 %v962_v45 }
 0x34d   : > { %2460 = vmatprep.mubr.msk.f32.mxu0 %vm1080_vm2, %v929_v25  ;;  %2466 = vmatprep.mubr.msk.f32.mxu1 %vm1080_vm2, %v949_v13 }
 0x350   : > { %2461 = vmatmul.mubr.msk.f32.vlgmr.msra.gmra.mrb[24].mxu0 %vm1080_vm2, %v934_v26  ;;  %2467 = vmatmul.mubr.msk.f32.vlgmr.msra.gmra.mrb[26].mxu1 %vm1080_vm2, %v954_v27 }
 0x351   : > { %2463 = vmatprep.mubr.msk.f32.mxu0 %vm1080_vm2, %v939_v48  ;;  %2469 = vmatprep.mubr.msk.f32.mxu1 %vm1080_vm2, %v959_v54 }
 0x354   : > { %2464 = vmatmul.mubr.msk.f32.gmra.mrb[26].mxu0 %vm1080_vm2, %v944_v56  ;;  %2470 = vmatmul.mubr.msk.f32.gmra.mrb[28].mxu1 %vm1080_vm2, %v964_v57 }
 0x403   : > { %v2288_v12 = vpop.f32.mrb[8].mxu0  ;;  %v2344_v41 = vpop.f32.mrb[10].mxu1 }
 0x404   : > { %v2289_v61 = vpop.f32.mrb[9].mxu0  ;;  %v2345_v17 = vpop.f32.mrb[11].mxu1 }
 0x405   : > { %v2290_v14 = vadd.f32 %v2289_v61, %v2288_v12  ;;  %v2346_v62 = vadd.f32 %v2345_v17, %v2344_v41 }
 0x407   : > { %v1172_v55 = vadd.f32 %v2290_v14, %v3403_v10  ;;  %v2291_v19 = vpop.f32.mrb[10].mxu0  ;;  %v2347_v49 = vpop.f32.mrb[12].mxu1 }
 0x408   : > { %v2292_v50 = vpop.f32.mrb[11].mxu0  ;;  %v2348_v63 = vpop.f32.mrb[13].mxu1 }
 0x409   : > { %v2293_v0 = vadd.f32 %v2292_v50, %v2291_v19  ;;  %v2349_v34 = vadd.f32 %v2348_v63, %v2347_v49  ;;  %v1277_v1 = vadd.f32 %v2346_v62, %v1172_v55 }
 0x40b   : > { %v1177_v52 = vadd.f32 %v2293_v0, %v3403_v10  ;;  %v2294_v3 = vpop.f32.mrb[12].mxu0  ;;  %v2350_v20 = vpop.f32.mrb[14].mxu1 }
 0x40c   : > { %v2295_v4 = vpop.f32.mrb[13].mxu0  ;;  %v2351_v60 = vpop.f32.mrb[15].mxu1 }
 0x40d   : > { %v2296_v8 = vadd.f32 %v2295_v4, %v2294_v3  ;;  %v2352_v5 = vadd.f32 %v2351_v60, %v2350_v20  ;;  %v1282_v6 = vadd.f32 %v2349_v34, %v1177_v52 }
 0x40f   : > { %v1182_v7 = vadd.f32 %v2296_v8, %v3403_v10  ;;  %v2297_v32 = vpop.f32.mrb[14].mxu0  ;;  %v2353_v59 = vpop.f32.mrb[16].mxu1 }
 0x410   : > { %v2298_v9 = vpop.f32.mrb[15].mxu0  ;;  %v2354_v11 = vpop.f32.mrb[17].mxu1 }
 0x411   : > { %v2299_v15 = vadd.f32 %v2298_v9, %v2297_v32  ;;  %v2355_v16 = vadd.f32 %v2354_v11, %v2353_v59  ;;  %v1287_v21 = vadd.f32 %v2352_v5, %v1182_v7 }
 0x413   : > { %v1187_v24 = vadd.f32 %v2299_v15, %v3403_v10  ;;  %v2300_v29 = vpop.f32.mrb[16].mxu0  ;;  %v2356_v30 = vpop.f32.mrb[18].mxu1 }
 0x414   : > { %v2301_v35 = vpop.f32.mrb[17].mxu0  ;;  %v2357_v38 = vpop.f32.mrb[19].mxu1 }
 0x415   : > { %v2302_v39 = vadd.f32 %v2301_v35, %v2300_v29  ;;  %v2358_v40 = vadd.f32 %v2357_v38, %v2356_v30  ;;  %v1292_v43 = vadd.f32 %v2355_v16, %v1187_v24 }
 0x417   : > { %v1192_v31 = vadd.f32 %v2302_v39, %v3403_v10  ;;  %v2303_v44 = vpop.f32.mrb[18].mxu0  ;;  %v2359_v45 = vpop.f32.mrb[20].mxu1 }
 0x418   : > { %v2304_v25 = vpop.f32.mrb[19].mxu0  ;;  %v2360_v13 = vpop.f32.mrb[21].mxu1 }
 0x419   : > { %v2305_v26 = vadd.f32 %v2304_v25, %v2303_v44  ;;  %v2361_v27 = vadd.f32 %v2360_v13, %v2359_v45  ;;  %v1297_v48 = vadd.f32 %v2358_v40, %v1192_v31 }
 0x41b   : > { %v1197_v54 = vadd.f32 %v2305_v26, %v3403_v10  ;;  %v2306_v56 = vpop.f32.mrb[20].mxu0  ;;  %v2362_v57 = vpop.f32.mrb[22].mxu1 }
 0x41c   : > { %v2307_v12 = vpop.f32.mrb[21].mxu0  ;;  %v2363_v41 = vpop.f32.mrb[23].mxu1 }
 0x41d   : > { %v2308_v61 = vadd.f32 %v2307_v12, %v2306_v56  ;;  %v2364_v17 = vadd.f32 %v2363_v41, %v2362_v57  ;;  %v1302_v14 = vadd.f32 %v2361_v27, %v1197_v54 }
 0x41f   : > { %v1202_v62 = vadd.f32 %v2308_v61, %v3403_v10  ;;  %v2309_v55 = vpop.f32.mrb[22].mxu0  ;;  %v2365_v19 = vpop.f32.mrb[24].mxu1 }
 0x420   : > { %v2310_v49 = vpop.f32.mrb[23].mxu0  ;;  %v2366_v50 = vpop.f32.mrb[25].mxu1 }
 0x421   : > { %v2311_v63 = vadd.f32 %v2310_v49, %v2309_v55  ;;  %v2367_v0 = vadd.f32 %v2366_v50, %v2365_v19  ;;  %v1307_v34 = vadd.f32 %v2364_v17, %v1202_v62 }
 0x423   : > { %v1207_v52 = vadd.f32 %v2311_v63, %v3403_v10  ;;  %v2462_v3 = vpop.f32.mrb[24].mxu0  ;;  %v2468_v20 = vpop.f32.mrb[26].mxu1 }
 0x424   : > { %v1387_v4 = vadd.f32 %v2462_v3, %v1282_v6  ;;  %v1407_v60 = vadd.f32 %v2468_v20, %v1302_v14  ;;  %v1381_v8 = vpop.f32.mrb[25].mxu0  ;;  %v1401_v5 = vpop.f32.mrb[27].mxu1 }
 0x425   : > { %v1382_v7 = vadd.f32 %v1381_v8, %v1277_v1  ;;  %v1402_v32 = vadd.f32 %v1401_v5, %v1297_v48  ;;  %v1312_v59 = vadd.f32 %v2367_v0, %v1207_v52 }
 0x426   : > { %v1423_v9 = vsel %vm523_vm1, %v1387_v4, 0.0  ;;  %v1435_v39 = vsel %vm523_vm1, %v1407_v60, 0.0 }
 0x427   : > { %v2465_v11 = vpop.f32.mrb[26].mxu0  ;;  %v2471_v15 = vpop.f32.mrb[28].mxu1  ;;  %1424 = vadd.xlane.f32.xlu1 %v1423_v9  ;;  %v1420_v16 = vsel %vm523_vm1, %v1382_v7, 0.0  ;;  %v1432_v40 = vsel %vm523_vm1, %v1402_v32, 0.0 }
 0x428   : > { %v1397_v24 = vadd.f32 %v2465_v11, %v1292_v43  ;;  %v1417_v29 = vadd.f32 %v2471_v15, %v1312_v59  ;;  %v1391_v30 = vpop.f32.mrb[27].mxu0  ;;  %v1411_v10 = vpop.f32.mrb[29].mxu1  ;;  %1421 = vadd.xlane.f32.xlu0 %v1420_v16 }
 0x429   : > { %v1392_v35 = vadd.f32 %v1391_v30, %v1287_v21  ;;  %v1412_v6 = vadd.f32 %v1411_v10, %v1307_v34  ;;  %v1548_v30 = vld [vmem:[%s3718_s7] sm:$0xff] }
 0x42a   : > { %v1429_v38 = vsel %vm523_vm1, %v1397_v24, 0.0  ;;  %v1441_v43 = vsel %vm523_vm1, %v1417_v29, 0.0  ;;  %2472 = vmatprep.subr.mxu1 %v1548_v30 }
 0x42b   : > { %1430 = vadd.xlane.f32.xlu1 %v1429_v38  ;;  %v1426_v1 = vsel %vm523_vm1, %v1392_v35, 0.0  ;;  %v1438_v31 = vsel %vm523_vm1, %v1412_v6, 0.0  ;;  %2473 = vmatpush3.msra.mxu1 %v1548_v30 }
 0x42c   : > { %1427 = vadd.xlane.f32.xlu0 %v1426_v1 }
 0x42f   : > { %1436 = vadd.xlane.f32.xlu1 %v1435_v39 }
 0x430   : > { %1433 = vadd.xlane.f32.xlu0 %v1432_v40 }
 0x433   : > { %1442 = vadd.xlane.f32.xlu1 %v1441_v43 }
 0x434   : > { %1439 = vadd.xlane.f32.xlu0 %v1438_v31 }
 0x4b4   : > { %v1425_v21 = vpop.xlane.xlu1 %1424 }
 0x4b5   : > { %v1445_v44 = vmul.f32 0.125, %v1425_v21  ;;  %v1422_v45 = vpop.xlane.xlu0 %1421 }
 0x4b6   : > { %v1444_v25 = vmul.f32 0.125, %v1422_v45 }
 0x4b7   : > { %v3421_v13 = vsub.f32 %v1387_v4, %v1445_v44 }
 0x4b8   : > { %v3423_v26 = vsub.f32 %v1382_v7, %v1444_v25  ;;  %v1431_v27 = vpop.xlane.xlu1 %1430 }
 0x4b9   : > { %v1447_v48 = vmul.f32 0.125, %v1431_v27  ;;  %v1428_v54 = vpop.xlane.xlu0 %1427  ;;  %v1461_v56 = vmul.f32 %v3421_v13, %v3421_v13 }
 0x4ba   : > { %v1446_v57 = vmul.f32 0.125, %v1428_v54  ;;  %v1460_v12 = vmul.f32 %v3423_v26, %v3423_v26 }
 0x4bb   : > { %v3429_v41 = vsub.f32 %v1397_v24, %v1447_v48  ;;  %v1471_v61 = vsel %vm523_vm1, %v1461_v56, 0.0 }
 0x4bc   : > { %v3432_v17 = vsub.f32 %v1392_v35, %v1446_v57  ;;  %1472 = vadd.xlane.f32.xlu1 %v1471_v61  ;;  %v1437_v14 = vpop.xlane.xlu1 %1436  ;;  %v1468_v62 = vsel %vm523_vm1, %v1460_v12, 0.0 }
 0x4bd   : > { %v1449_v55 = vmul.f32 0.125, %v1437_v14  ;;  %1469 = vadd.xlane.f32.xlu0 %v1468_v62  ;;  %v1434_v19 = vpop.xlane.xlu0 %1433  ;;  %v1463_v49 = vmul.f32 %v3429_v41, %v3429_v41  ;;  %v1527_v62 = vrot.slane %v3399_v58, %v3066_v51 }
 0x4be   : > { %v1448_v50 = vmul.f32 0.125, %v1434_v19  ;;  %v1462_v63 = vmul.f32 %v3432_v17, %v3432_v17 }
 0x4bf   : > { %v3439_v0 = vsub.f32 %v1407_v60, %v1449_v55  ;;  %v1477_v34 = vsel %vm523_vm1, %v1463_v49, 0.0 }
 0x4c0   : > { %v3442_v52 = vsub.f32 %v1402_v32, %v1448_v50  ;;  %1478 = vadd.xlane.f32.xlu1 %v1477_v34  ;;  %v1443_v3 = vpop.xlane.xlu1 %1442  ;;  %v1474_v20 = vsel %vm523_vm1, %v1462_v63, 0.0 }
 0x4c1   : > { %v1451_v4 = vmul.f32 0.125, %v1443_v3  ;;  %1475 = vadd.xlane.f32.xlu0 %v1474_v20  ;;  %v1440_v8 = vpop.xlane.xlu0 %1439  ;;  %v1465_v5 = vmul.f32 %v3439_v0, %v3439_v0  ;;  %v1539_v3 = vrot.slane %v3399_v58, %v3072_v37 }
 0x4c2   : > { %v1450_v7 = vmul.f32 0.125, %v1440_v8  ;;  %v1464_v59 = vmul.f32 %v3442_v52, %v3442_v52 }
 0x4c3   : > { %v3449_v60 = vsub.f32 %v1417_v29, %v1451_v4  ;;  %v1483_v9 = vsel %vm523_vm1, %v1465_v5, 0.0 }
 0x4c4   : > { %v3452_v32 = vsub.f32 %v1412_v6, %v1450_v7  ;;  %1484 = vadd.xlane.f32.xlu1 %v1483_v9  ;;  %v1480_v11 = vsel %vm523_vm1, %v1464_v59, 0.0 }
 0x4c5   : > { %1481 = vadd.xlane.f32.xlu0 %v1480_v11  ;;  %v1467_v15 = vmul.f32 %v3449_v60, %v3449_v60 }
 0x4c6   : > { %v1466_v16 = vmul.f32 %v3452_v32, %v3452_v32 }
 0x4c7   : > { %v1489_v24 = vsel %vm523_vm1, %v1467_v15, 0.0 }
 0x4c8   : > { %1490 = vadd.xlane.f32.xlu1 %v1489_v24  ;;  %v1486_v29 = vsel %vm523_vm1, %v1466_v16, 0.0 }
 0x4c9   : > { %1487 = vadd.xlane.f32.xlu0 %v1486_v29 }
 0x549   : > { %v1473_v10 = vpop.xlane.xlu1 %1472 }
 0x54a   : > { %v1493_v35 = vmul.f32 0.125, %v1473_v10  ;;  %v1470_v6 = vpop.xlane.xlu0 %1469 }
 0x54b   : > { %v1492_v38 = vmul.f32 0.125, %v1470_v6 }
 0x54c   : > { %v1501_v1 = vadd.f32 1e-06, %v1493_v35 }
 0x54d   : > { %v1500_v39 = vadd.f32 1e-06, %v1492_v38  ;;  %v1479_v40 = vpop.xlane.xlu1 %1478 }
 0x54e   : > { %2675 = vrsqrt.f32 %v1501_v1  ;;  %v1495_v43 = vmul.f32 0.125, %v1479_v40  ;;  %v1476_v31 = vpop.xlane.xlu0 %1475 }
 0x54f   : > { %2677 = vrsqrt.f32 %v1500_v39  ;;  %v1494_v21 = vmul.f32 0.125, %v1476_v31 }
 0x550   : > { %v1503_v44 = vadd.f32 1e-06, %v1495_v43 }
 0x551   : > { %v1502_v45 = vadd.f32 1e-06, %v1494_v21  ;;  %v1485_v25 = vpop.xlane.xlu1 %1484  ;;  %v1900_v21 = vld [vmem:[%s3719_s8 + $0x10] sm:$0xff] }
 0x552   : > { %2679 = vrsqrt.f32 %v1503_v44  ;;  %v1497_v27 = vmul.f32 0.125, %v1485_v25  ;;  %v1482_v48 = vpop.xlane.xlu0 %1481  ;;  %v1901_v44 = vld [vmem:[%s3719_s8 + $0x18] sm:$0xff]  ;;  %v3498_v25 = vrot.slane %v3399_v58, %v3011_v46 }
 0x553   : > { %2681 = vrsqrt.f32 %v1502_v45  ;;  %v1496_v54 = vmul.f32 0.125, %v1482_v48  ;;  %v2602_v45 = vpack.c.bf16 %v1901_v44, %v1900_v21 }
 0x554   : > { %v1505_v56 = vadd.f32 1e-06, %v1497_v27 }
 0x555   : > { %v1504_v57 = vadd.f32 1e-06, %v1496_v54  ;;  %v1491_v12 = vpop.xlane.xlu1 %1490 }
 0x556   : > { %2683 = vrsqrt.f32 %v1505_v56  ;;  %v1499_v61 = vmul.f32 0.125, %v1491_v12  ;;  %v1488_v14 = vpop.xlane.xlu0 %1487 }
 0x557   : > { %2685 = vrsqrt.f32 %v1504_v57  ;;  %v1498_v55 = vmul.f32 0.125, %v1488_v14 }
 0x558   : > { %v2676_v19 = vpop.eup %2675  ;;  %v1507_v49 = vadd.f32 1e-06, %v1499_v61 }
 0x559   : > { %v2678_v50 = vpop.eup %2677  ;;  %v1517_v63 = vmul.f32 %v2676_v19, %v3421_v13  ;;  %v1506_v34 = vadd.f32 1e-06, %v1498_v55 }
 0x55a   : > { %2687 = vrsqrt.f32 %v1507_v49  ;;  %v1516_v20 = vmul.f32 %v2678_v50, %v3423_v26 }
 0x55b   : > { %v1529_v4 = vmul.f32 %v1527_v62, %v1517_v63  ;;  %2689 = vrsqrt.f32 %v1506_v34 }
 0x55c   : > { %v2680_v8 = vpop.eup %2679  ;;  %v1528_v5 = vmul.f32 %v1527_v62, %v1516_v20 }
 0x55d   : > { %v2682_v7 = vpop.eup %2681  ;;  %v1519_v51 = vmul.f32 %v2680_v8, %v3429_v41  ;;  %v1541_v11 = vadd.f32 %v1539_v3, %v1529_v4 }
 0x55e   : > { %v1540_v59 = vadd.f32 %v1539_v3, %v1528_v5  ;;  %v1518_v9 = vmul.f32 %v2682_v7, %v3432_v17 }
 0x55f   : > { %v1531_v15 = vmul.f32 %v1527_v62, %v1519_v51 }
 0x560   : > { %v2684_v13 = vpop.eup %2683  ;;  %2474 = vmatprep.mubr.msk.f32.mxu1 %vm523_vm1, %v1540_v59  ;;  %v1530_v16 = vmul.f32 %v1527_v62, %v1518_v9 }
 0x561   : > { %v2686_v37 = vpop.eup %2685  ;;  %2475 = vmatmul.mubr.msk.f32.vlgmr.msra.gmra.mrb[30].mxu1 %vm523_vm1, %v1541_v11  ;;  %v1521_v26 = vmul.f32 %v2684_v13, %v3439_v0  ;;  %v1543_v30 = vadd.f32 %v1539_v3, %v1531_v15 }
 0x562   : > { %v1542_v24 = vadd.f32 %v1539_v3, %v1530_v16  ;;  %v1520_v29 = vmul.f32 %v2686_v37, %v3442_v52 }
 0x563   : > { %v1533_v10 = vmul.f32 %v1527_v62, %v1521_v26 }
 0x564   : > { %v2688_v41 = vpop.eup %2687  ;;  %2477 = vmatprep.mubr.msk.f32.mxu1 %vm523_vm1, %v1542_v24  ;;  %v1532_v17 = vmul.f32 %v1527_v62, %v1520_v29 }
 0x565   : > { %v2690_v35 = vpop.eup %2689  ;;  %2478 = vmatmul.mubr.msk.f32.gmra.mrb[32].mxu1 %vm523_vm1, %v1543_v30  ;;  %v1523_v6 = vmul.f32 %v2688_v41, %v3449_v60  ;;  %v1545_v39 = vadd.f32 %v1539_v3, %v1533_v10  ;;  %v1898_v60 = vld [vmem:[%s3719_s8] sm:$0xff] }
 0x566   : > { %v1544_v38 = vadd.f32 %v1539_v3, %v1532_v17  ;;  %v1522_v1 = vmul.f32 %v2690_v35, %v3452_v32  ;;  %v1899_v32 = vld [vmem:[%s3719_s8 + $0x8] sm:$0xff] }
 0x567   : > { %v1535_v40 = vmul.f32 %v1527_v62, %v1523_v6  ;;  %v2598_v31 = vpack.c.bf16 %v1899_v32, %v1898_v60 }
 0x568   : > { %2480 = vmatprep.mubr.msk.f32.mxu1 %vm523_vm1, %v1544_v38  ;;  %v1534_v0 = vmul.f32 %v1527_v62, %v1522_v1  ;;  %v2787_v1 = vmov 1.0  }
 0x569   : > { %2481 = vmatmul.mubr.msk.f32.gmra.mrb[34].mxu1 %vm523_vm1, %v1545_v39  ;;  %v1547_v43 = vadd.f32 %v1539_v3, %v1535_v40  ;;  %2599 = vmatprep.subr.bf16.mxu0 %v2598_v31 }
 0x56a   : > { %v1546_v52 = vadd.f32 %v1539_v3, %v1534_v0  ;;  %2601 = vmatpush3.bf16.msra.mxu0 %v2598_v31 }
 0x56b   : > { %2603 = vmatprep.subr.bf16.mxu0 %v2602_v45 }
 0x56c   : > { %2483 = vmatprep.mubr.msk.f32.mxu1 %vm523_vm1, %v1546_v52 }
 0x56d   : > { %2484 = vmatmul.mubr.msk.f32.gmra.mrb[36].mxu1 %vm523_vm1, %v1547_v43 }
 0x56e   : > { %2605 = vmatpush3.bf16.msra.mxu0 %v2602_v45 }
 0x634   : > { %v2476_v27 = vpop.f32.mrb[30].mxu1 }
 0x635   : > { %v1649_v48 = vadd.f32 %v2476_v27, %v3498_v25  ;;  %v1643_v54 = vpop.f32.mrb[31].mxu1 }
 0x636   : > { %v1644_v56 = vadd.f32 %v1643_v54, %v3498_v25 }
 0x637   : > { %v1683_v57 = vmul.f32 0.70710677, %v1649_v48  ;;  %v3539_v40 = vmul.f32 0.5, %v1649_v48 }
 0x638   : > { %v1682_v12 = vmul.f32 0.70710677, %v1644_v56  ;;  %v2479_v61 = vpop.f32.mrb[32].mxu1  ;;  %v3541_v0 = vmul.f32 0.5, %v1644_v56 }
 0x639   : > { %v1707_v14 = vand.u32 2147483647, %v1683_v57  ;;  %v3503_v62 = vadd.f32 %v2479_v61, %v3498_v25  ;;  %v1653_v55 = vpop.f32.mrb[33].mxu1  ;;  %vm1691_vm3 = vcmp.lt.f32.partialorder %v1683_v57, 0.0 }
 0x63a   : > { %v1706_v19 = vand.u32 2147483647, %v1682_v12  ;;  %v3506_v49 = vadd.f32 %v1653_v55, %v3498_v25  ;;  %vm1690_vm4 = vcmp.lt.f32.partialorder %v1682_v12, 0.0  ;;  %v3537_v39 = vsel %vm1691_vm3, -1.0, %v2787_v1 }
 0x63b   : > { %v1715_v46 = vmul.f32 0.3275911, %v1707_v14  ;;  %v3509_v50 = vmul.f32 0.70710677, %v3503_v62  ;;  %v1819_v29 = vsub.f32 0.0, %v1707_v14  ;;  %v3547_v32 = vsel %vm1690_vm4, -1.0, %v2787_v1 }
 0x63c   : > { %v1714_v63 = vmul.f32 0.3275911, %v1706_v19  ;;  %v3512_v34 = vmul.f32 0.70710677, %v3506_v49  ;;  %v2482_v4 = vpop.f32.mrb[34].mxu1  ;;  %v1818_v41 = vsub.f32 0.0, %v1706_v19 }
 0x63d   : > { %v1723_v3 = vadd.f32 1.0, %v1715_v46  ;;  %v1709_v20 = vand.u32 2147483647, %v3509_v50  ;;  %v1663_v5 = vpop.f32.mrb[35].mxu1  ;;  %v3517_v13 = vadd.f32 %v2482_v4, %v3498_v25  ;;  %v1827_v60 = vmul.f32 %v1819_v29, %v1707_v14 }
 0x63e   : > { %v1722_v8 = vadd.f32 1.0, %v1714_v63  ;;  %v1708_v51 = vand.u32 2147483647, %v3512_v34  ;;  %v3520_v16 = vadd.f32 %v1663_v5, %v3498_v25  ;;  %v1826_v27 = vmul.f32 %v1818_v41, %v1706_v19 }
 0x63f   : > { %2691 = vrcp.f32 %v1723_v3  ;;  %v1717_v7 = vmul.f32 0.3275911, %v1709_v20  ;;  %v3526_v24 = vmul.f32 0.70710677, %v3517_v13  ;;  %v1821_v17 = vsub.f32 0.0, %v1709_v20 }
 0x640   : > { %2693 = vrcp.f32 %v1722_v8  ;;  %v2485_v59 = vpop.f32.mrb[36].mxu1  ;;  %v1716_v15 = vmul.f32 0.3275911, %v1708_v51  ;;  %v3529_v30 = vmul.f32 0.70710677, %v3520_v16  ;;  %v1820_v6 = vsub.f32 0.0, %v1708_v51 }
 0x641   : > { %v1725_v9 = vadd.f32 1.0, %v1717_v7  ;;  %v1673_v11 = vpop.f32.mrb[37].mxu1  ;;  %v3523_v37 = vadd.f32 %v2485_v59, %v3498_v25  ;;  %v1711_v35 = vand.u32 2147483647, %v3526_v24  ;;  %v1829_v48 = vmul.f32 %v1821_v17, %v1709_v20 }
 0x642   : > { %v1724_v26 = vadd.f32 1.0, %v1716_v15  ;;  %v1710_v38 = vand.u32 2147483647, %v3529_v30  ;;  %v1828_v57 = vmul.f32 %v1820_v6, %v1708_v51  ;;  %vm1693_vm5 = vcmp.lt.f32.partialorder %v3509_v50, 0.0 }
 0x643   : > { %2695 = vrcp.f32 %v1725_v9  ;;  %v3532_v10 = vmul.f32 0.70710677, %v3523_v37  ;;  %v1719_v52 = vmul.f32 0.3275911, %v1711_v35  ;;  %v1823_v55 = vsub.f32 0.0, %v1711_v35 }
 0x644   : > { %2697 = vrcp.f32 %v1724_v26  ;;  %v1718_v31 = vmul.f32 0.3275911, %v1710_v38  ;;  %v1836_v63 = vmul.f32 1.442695, %v1827_v60  ;;  %v1834_v20 = vmul.f32 1.442695, %v1826_v27 }
 0x645   : > { %v3550_v21 = vand.u32 2147483647, %v3532_v10  ;;  %v1727_v54 = vadd.f32 1.0, %v1719_v52  ;;  %v1822_v5 = vsub.f32 0.0, %v1710_v38  ;;  %v1840_v51 = vmul.f32 1.442695, %v1829_v48 }
 0x646   : > { %v1726_v61 = vadd.f32 1.0, %v1718_v31  ;;  %v1838_v59 = vmul.f32 1.442695, %v1828_v57  ;;  %v3564_v9 = vadd.f32 %v1673_v11, %v3498_v25  ;;  %v1831_v41 = vmul.f32 %v1823_v55, %v1711_v35 }
 0x647   : > { %v1721_v14 = vmul.f32 0.3275911, %v3550_v21  ;;  %2699 = vrcp.f32 %v1727_v54  ;;  %v1830_v25 = vmul.f32 %v1822_v5, %v1710_v38  ;;  %v3578_v35 = vsel %vm1693_vm5, -1.0, %v2787_v1 }
 0x648   : > { %2701 = vrcp.f32 %v1726_v61  ;;  %v3570_v52 = vmul.f32 0.70710677, %v3564_v9  ;;  %vm1692_vm6 = vcmp.lt.f32.partialorder %v3512_v34, 0.0  ;;  %vm1695_vm8 = vcmp.lt.f32.partialorder %v3526_v24, 0.0 }
 0x649   : > { %v3543_v43 = vpop.eup %2691  ;;  %v1729_v4 = vadd.f32 1.0, %v1721_v14  ;;  %v1842_v55 = vmul.f32 1.442695, %v1830_v25  ;;  %vm1694_vm9 = vcmp.lt.f32.partialorder %v3529_v30, 0.0  ;;  %vm1697_vm10 = vcmp.lt.f32.partialorder %v3532_v10, 0.0 }
 0x64a   : > { %v3552_v44 = vpop.eup %2693  ;;  %v1747_v45 = vmul.f32 1.0614054, %v3543_v43  ;;  %v3581_v27 = vand.u32 2147483647, %v3570_v52  ;;  %v1702_v24 = vsel %vm1694_vm9, -1.0, %v2787_v1  ;;  %vm1696_vm11 = vcmp.lt.f32.partialorder %v3570_v52, 0.0 }
 0x64b   : > { %v1746_v56 = vmul.f32 1.0614054, %v3552_v44  ;;  %2703 = vrcp.f32 %v1729_v4  ;;  %v1880_v10 = vmul.f32 0.5, %v3564_v9  ;;  %v1905_v52 = vrot.slane %v3399_v58, %v2925_v18 }
 0x64c   : > { %v1755_v12 = vadd.f32 -1.4531521, %v1747_v45  ;;  %2705 = vpow2.f32 %v1836_v63  ;;  %v1720_v38 = vmul.f32 0.3275911, %v3581_v27  ;;  %v1825_v63 = vsub.f32 0.0, %v3550_v21 }
 0x64d   : > { %v3558_v46 = vpop.eup %2695  ;;  %v1754_v3 = vadd.f32 -1.4531521, %v1746_v56  ;;  %2707 = vpow2.f32 %v1834_v20  ;;  %v1844_v56 = vmul.f32 1.442695, %v1831_v41 }
 0x64e   : > { %v1763_v19 = vmul.f32 %v3543_v43, %v1755_v12  ;;  %v1749_v8 = vmul.f32 1.0614054, %v3558_v46  ;;  %v3566_v15 = vpop.eup %2697  ;;  %2709 = vpow2.f32 %v1840_v51 }
 0x64f   : > { %v1762_v7 = vmul.f32 %v3552_v44, %v1754_v3  ;;  %v1748_v6 = vmul.f32 1.0614054, %v3566_v15  ;;  %2711 = vpow2.f32 %v1838_v59 }
 0x650   : > { %v1771_v26 = vadd.f32 1.4214138, %v1763_v19  ;;  %v1757_v29 = vadd.f32 -1.4531521, %v1749_v8  ;;  %v1728_v8 = vadd.f32 1.0, %v1720_v38  ;;  %2713 = vpow2.f32 %v1844_v56 }
 0x651   : > { %v1770_v17 = vadd.f32 1.4214138, %v1762_v7  ;;  %v1756_v45 = vadd.f32 -1.4531521, %v1748_v6  ;;  %v3585_v14 = vpop.eup %2699 }
 0x652   : > { %v1779_v60 = vmul.f32 %v3543_v43, %v1771_v26  ;;  %v1765_v31 = vmul.f32 %v3558_v46, %v1757_v29  ;;  %v3590_v3 = vpop.eup %2701  ;;  %v1751_v20 = vmul.f32 1.0614054, %v3585_v14  ;;  %2715 = vrcp.f32 %v1728_v8 }
 0x653   : > { %v1778_v11 = vmul.f32 %v3552_v44, %v1770_v17  ;;  %v1764_v61 = vmul.f32 %v3566_v15, %v1756_v45  ;;  %v1750_v51 = vmul.f32 1.0614054, %v3590_v3  ;;  %2717 = vpow2.f32 %v1842_v55 }
 0x654   : > { %v1787_v48 = vadd.f32 -0.28449672, %v1779_v60  ;;  %v1773_v54 = vadd.f32 1.4214138, %v1765_v31  ;;  %v1759_v29 = vadd.f32 -1.4531521, %v1751_v20  ;;  %v1833_v31 = vmul.f32 %v1825_v63, %v3550_v21 }
 0x655   : > { %v1786_v57 = vadd.f32 -0.28449672, %v1778_v11  ;;  %v1772_v19 = vadd.f32 1.4214138, %v1764_v61  ;;  %v3596_v41 = vpop.eup %2703  ;;  %v1758_v60 = vadd.f32 -1.4531521, %v1750_v51 }
 0x656   : > { %v1795_v50 = vmul.f32 %v3543_v43, %v1787_v48  ;;  %v1781_v12 = vmul.f32 %v3558_v46, %v1773_v54  ;;  %v2706_v25 = vpop.eup %2705  ;;  %v1767_v48 = vmul.f32 %v3585_v14, %v1759_v29  ;;  %v1753_v54 = vmul.f32 1.0614054, %v3596_v41 }
 0x657   : > { %v1794_v4 = vmul.f32 %v3552_v44, %v1786_v57  ;;  %v1780_v26 = vmul.f32 %v3566_v15, %v1772_v19  ;;  %v2708_v56 = vpop.eup %2707  ;;  %v1824_v20 = vsub.f32 0.0, %v3581_v27 }
 0x658   : > { %v1803_v5 = vadd.f32 0.2548296, %v1795_v50  ;;  %v1789_v7 = vadd.f32 -0.28449672, %v1781_v12  ;;  %v1775_v50 = vadd.f32 1.4214138, %v1767_v48 }
 0x659   : > { %v1802_v59 = vadd.f32 0.2548296, %v1794_v4  ;;  %v1788_v45 = vadd.f32 -0.28449672, %v1780_v26  ;;  %v1761_v12 = vadd.f32 -1.4531521, %v1753_v54 }
 0x65a   : > { %v1811_v17 = vmul.f32 %v3543_v43, %v1803_v5  ;;  %v1797_v6 = vmul.f32 %v3558_v46, %v1789_v7  ;;  %v1766_v43 = vmul.f32 %v3590_v3, %v1758_v60  ;;  %v1783_v51 = vmul.f32 %v3585_v14, %v1775_v50 }
 0x65b   : > { %v1810_v11 = vmul.f32 %v3552_v44, %v1802_v59  ;;  %v1796_v21 = vmul.f32 %v3566_v15, %v1788_v45  ;;  %v2710_v44 = vpop.eup %2709  ;;  %v1769_v55 = vmul.f32 %v3596_v41, %v1761_v12 }
 0x65c   : > { %v1851_v57 = vmul.f32 %v2706_v25, %v1811_v17  ;;  %v1805_v61 = vadd.f32 0.2548296, %v1797_v6  ;;  %v1774_v19 = vadd.f32 1.4214138, %v1766_v43  ;;  %v2712_v8 = vpop.eup %2711  ;;  %v1848_v17 = vmul.f32 1.442695, %v1833_v31 }
 0x65d   : > { %v1850_v38 = vmul.f32 %v2708_v56, %v1810_v11  ;;  %v1804_v7 = vadd.f32 0.2548296, %v1796_v21  ;;  %v1791_v60 = vadd.f32 -0.28449672, %v1783_v51  ;;  %v1777_v25 = vadd.f32 1.4214138, %v1769_v55  ;;  %v2714_v11 = vpop.eup %2713 }
 0x65e   : > { %v1859_v63 = vsub.f32 1.0, %v1851_v57  ;;  %v1813_v4 = vmul.f32 %v3558_v46, %v1805_v61  ;;  %v1782_v29 = vmul.f32 %v3590_v3, %v1774_v19  ;;  %v1832_v56 = vmul.f32 %v1824_v20, %v3581_v27  ;;  %v2716_v57 = vpop.eup %2715 }
 0x65f   : > { %v1858_v5 = vsub.f32 1.0, %v1850_v38  ;;  %v1812_v46 = vmul.f32 %v3566_v15, %v1804_v7  ;;  %v1785_v38 = vmul.f32 %v3596_v41, %v1777_v25  ;;  %2719 = vpow2.f32 %v1848_v17 }
 0x660   : > { %v1867_v59 = vmul.f32 %v1859_v63, %v3537_v39  ;;  %v1853_v26 = vmul.f32 %v2710_v44, %v1813_v4  ;;  %v1790_v54 = vadd.f32 -0.28449672, %v1782_v29  ;;  %v1799_v39 = vmul.f32 %v3585_v14, %v1791_v60  ;;  %v2718_v63 = vpop.eup %2717 }
 0x661   : > { %v1866_v6 = vmul.f32 %v1858_v5, %v3547_v32  ;;  %v1852_v43 = vmul.f32 %v2712_v8, %v1812_v46  ;;  %v1752_v15 = vmul.f32 1.0614054, %v2716_v57  ;;  %v1793_v44 = vadd.f32 -0.28449672, %v1785_v38 }
 0x662   : > { %v1883_v45 = vadd.f32 1.0, %v1867_v59  ;;  %v1861_v48 = vsub.f32 1.0, %v1853_v26  ;;  %v1798_v32 = vmul.f32 %v3590_v3, %v1790_v54  ;;  %v1807_v12 = vadd.f32 0.2548296, %v1799_v39 }
 0x663   : > { %v1882_v61 = vadd.f32 1.0, %v1866_v6  ;;  %v1860_v50 = vsub.f32 1.0, %v1852_v43  ;;  %v1700_v4 = vsel %vm1692_vm6, -1.0, %v2787_v1  ;;  %v1760_v20 = vadd.f32 -1.4531521, %v1752_v15 }
 0x664   : > { %v1869_v31 = vmul.f32 %v1861_v48, %v3578_v35  ;;  %v1891_v27 = vmul.f32 %v1883_v45, %v3539_v40  ;;  %v1806_v19 = vadd.f32 0.2548296, %v1798_v32  ;;  %v1815_v35 = vmul.f32 %v3585_v14, %v1807_v12 }
 0x665   : > { %v1890_v21 = vmul.f32 %v1882_v61, %v3541_v0  ;;  %v1868_v8 = vmul.f32 %v1860_v50, %v1700_v4  ;;  %v1801_v5 = vmul.f32 %v3596_v41, %v1793_v44  ;;  %v1846_v7 = vmul.f32 1.442695, %v1832_v56 }
 0x666   : > { %v1885_v0 = vadd.f32 1.0, %v1869_v31  ;;  %v1876_v51 = vmul.f32 0.5, %v3506_v49  ;;  %v1814_v55 = vmul.f32 %v3590_v3, %v1806_v19  ;;  %v1768_v40 = vmul.f32 %v2716_v57, %v1760_v20 }
 0x667   : > { %2494 = vmatprep.mubr.msk.f32.mxu0 %vm1906_vm7, %v1890_v21  ;;  %v1884_v34 = vadd.f32 1.0, %v1868_v8  ;;  %v1855_v59 = vmul.f32 %v2714_v11, %v1815_v35  ;;  %v1809_v26 = vadd.f32 0.2548296, %v1801_v5  ;;  %v1877_v14 = vmul.f32 0.5, %v3503_v62 }
 0x668   : > { %2495 = vmatmul.mubr.msk.f32.vlgmr.msra.gmra.mrb[28].mxu0 %vm1906_vm7, %v1891_v27  ;;  %v1854_v29 = vmul.f32 %v2718_v63, %v1814_v55  ;;  %v1776_v17 = vadd.f32 1.4214138, %v1768_v40  ;;  %2721 = vpow2.f32 %v1846_v7  ;;  %v1703_v60 = vsel %vm1695_vm8, -1.0, %v2787_v1 }
 0x669   : > { %v1892_v6 = vmul.f32 %v1884_v34, %v1876_v51  ;;  %v1863_v46 = vsub.f32 1.0, %v1855_v59  ;;  %v1817_v49 = vmul.f32 %v3596_v41, %v1809_v26  ;;  %v1893_v3 = vmul.f32 %v1885_v0, %v1877_v14  ;;  %v2720_v62 = vpop.eup %2719 }
 0x66a   : > { %v1862_v25 = vsub.f32 1.0, %v1854_v29  ;;  %v1784_v45 = vmul.f32 %v2716_v57, %v1776_v17  ;;  %v1878_v41 = vmul.f32 0.5, %v3520_v16  ;;  %v1879_v39 = vmul.f32 0.5, %v3517_v13 }
 0x66b   : > { %v1871_v48 = vmul.f32 %v1863_v46, %v1703_v60  ;;  %2497 = vmatprep.mubr.msk.f32.mxu0 %vm1906_vm7, %v1892_v6  ;;  %v1857_v56 = vmul.f32 %v2720_v62, %v1817_v49  ;;  %v1705_v12 = vsel %vm1697_vm10, -1.0, %v2787_v1  ;;  %v1704_v13 = vsel %vm1696_vm11, -1.0, %v2787_v1 }
 0x66c   : > { %v1870_v11 = vmul.f32 %v1862_v25, %v1702_v24  ;;  %v1792_v30 = vadd.f32 -0.28449672, %v1784_v45  ;;  %2498 = vmatmul.mubr.msk.f32.gmra.mrb[30].mxu0 %vm1906_vm7, %v1893_v3  ;;  %v2039_v35 = vrot.slane %v3399_v58, %v2999_v36 }
 0x66d   : > { %v1887_v54 = vadd.f32 1.0, %v1871_v48  ;;  %v1865_v15 = vsub.f32 1.0, %v1857_v56 }
 0x66e   : > { %v1886_v61 = vadd.f32 1.0, %v1870_v11  ;;  %v1800_v43 = vmul.f32 %v2716_v57, %v1792_v30 }
 0x66f   : > { %v1895_v32 = vmul.f32 %v1887_v54, %v1879_v39  ;;  %v1873_v44 = vmul.f32 %v1865_v15, %v1705_v12 }
 0x670   : > { %v1894_v38 = vmul.f32 %v1886_v61, %v1878_v41  ;;  %v1808_v31 = vadd.f32 0.2548296, %v1800_v43 }
 0x671   : > { %v1889_v4 = vadd.f32 1.0, %v1873_v44 }
 0x672   : > { %v1816_v21 = vmul.f32 %v2716_v57, %v1808_v31  ;;  %2500 = vmatprep.mubr.msk.f32.mxu0 %vm1906_vm7, %v1894_v38  ;;  %v2722_v50 = vpop.eup %2721  ;;  %v1881_v57 = vmul.f32 0.5, %v3523_v37 }
 0x673   : > { %2501 = vmatmul.mubr.msk.f32.gmra.mrb[32].mxu0 %vm1906_vm7, %v1895_v32 }
 0x674   : > { %v1856_v16 = vmul.f32 %v2722_v50, %v1816_v21  ;;  %v1897_v8 = vmul.f32 %v1889_v4, %v1881_v57 }
 0x676   : > { %v1864_v63 = vsub.f32 1.0, %v1856_v16 }
 0x678   : > { %v1872_v27 = vmul.f32 %v1864_v63, %v1704_v13 }
 0x67a   : > { %v1888_v19 = vadd.f32 1.0, %v1872_v27 }
 0x67c   : > { %v1896_v20 = vmul.f32 %v1888_v19, %v1880_v10 }
 0x67e   : > { %2503 = vmatprep.mubr.msk.f32.mxu0 %vm1906_vm7, %v1896_v20 }
 0x67f   : > { %2504 = vmatmul.mubr.msk.f32.gmra.mrb[34].mxu0 %vm1906_vm7, %v1897_v8 }
 0x73b   : > { %v2496_v1 = vpop.f32.mrb[28].mxu0 }
 0x73c   : > { %v2003_v5 = vadd.f32 %v2496_v1, %v1905_v52  ;;  %v1997_v7 = vpop.f32.mrb[29].mxu0 }
 0x73d   : > { %v1998_v0 = vadd.f32 %v1997_v7, %v1905_v52 }
 0x73e   : > { %v2041_v9 = vmul.f32 %v2039_v35, %v2003_v5 }
 0x73f   : > { %v2040_v51 = vmul.f32 %v2039_v35, %v1998_v0  ;;  %v2499_v55 = vpop.f32.mrb[30].mxu0 }
 0x740   : > { %v2013_v40 = vadd.f32 %v2499_v55, %v1905_v52  ;;  %v2007_v34 = vpop.f32.mrb[31].mxu0  ;;  %v2049_v18 = vadd.f32 %v2041_v9, %v3108_v22 }
 0x741   : > { %v2048_v37 = vadd.f32 %v2040_v51, %v3112_v28  ;;  %v2008_v59 = vadd.f32 %v2007_v34, %v1905_v52 }
 0x742   : > { %v2043_v26 = vmul.f32 %v2039_v35, %v2013_v40 }
 0x743   : > { %2056 = vxpose.xlu0.b32.start [1/8] (short) (narrow) %v2048_v37, 8  ;;  %v2042_v14 = vmul.f32 %v2039_v35, %v2008_v59 }
 0x744   : > { %v2051_v28 = vadd.f32 %v2043_v26, %v3130_v47 }
 0x745   : > { %v2050_v17 = vadd.f32 %v2042_v14, %v3144_v53 }
 0x746   : > { %v2502_v29 = vpop.f32.mrb[32].mxu0 }
 0x747   : > { %2057 = vxpose.xlu0.b32.cont [2/8] (short) (narrow) %v2049_v18, 8  ;;  %v2023_v36 = vadd.f32 %v2502_v29, %v1905_v52  ;;  %v2017_v58 = vpop.f32.mrb[33].mxu0 }
 0x748   : > { %v2018_v6 = vadd.f32 %v2017_v58, %v1905_v52 }
 0x749   : > { %v2045_v46 = vmul.f32 %v2039_v35, %v2023_v36 }
 0x74a   : > { %v2044_v49 = vmul.f32 %v2039_v35, %v2018_v6 }
 0x74b   : > { %2058 = vxpose.xlu0.b32.cont [3/8] (short) (narrow) %v2050_v17, 8  ;;  %v2053_v45 = vadd.f32 %v2045_v46, %v3158_v42 }
 0x74c   : > { %v2052_v3 = vadd.f32 %v2044_v49, %v3164_v2 }
 0x74f   : > { %2059 = vxpose.xlu0.b32.cont [4/8] (short) (narrow) %v2051_v28, 8 }
 0x752   : > { %v2505_v60 = vpop.f32.mrb[34].mxu0 }
 0x753   : > { %2060 = vxpose.xlu0.b32.cont [5/8] (short) (narrow) %v2052_v3, 8  ;;  %v2033_v22 = vadd.f32 %v2505_v60, %v1905_v52  ;;  %v2027_v25 = vpop.f32.mrb[35].mxu0 }
 0x754   : > { %v2028_v48 = vadd.f32 %v2027_v25, %v1905_v52 }
 0x755   : > { %v2047_v24 = vmul.f32 %v2039_v35, %v2033_v22 }
 0x756   : > { %v2046_v53 = vmul.f32 %v2039_v35, %v2028_v48 }
 0x757   : > { %2061 = vxpose.xlu0.b32.cont [6/8] (short) (narrow) %v2053_v45, 8  ;;  %v2055_v47 = vadd.f32 %v2047_v24, %v3178_v23 }
 0x758   : > { %v2054_v62 = vadd.f32 %v2046_v53, %v3184_v33 }
 0x75b   : > { %2062 = vxpose.xlu0.b32.cont [7/8] (short) (narrow) %v2054_v62, 8 }
 0x75f   : > { %2063 = vxpose.xlu0.b32.end [8/8] (short) (narrow) %v2055_v47, 8 }
 0x7c3   : > { %v2072_v42 = vpop.trf.xlu0 }
 0x7c4   : > { %2088 = vst.msk [vmem:[%s367_s27] sm:$0xff] %vm1080_vm2, %v2072_v42 }
 0x7c5   : > { %2736 = shalt.err (!%p2733_p3)
}
 0x7c6   : > { %s2737_s21 = scalar_lea.hbm %s3668_s11, 128  ;;  %s2741_s29 = scalar_lea.hbm %s3721_s10, 256 }
 0x7c7   : > { %p2738_p4 = scmp.ne.s32.totalorder %s3668_s11, %s2737_s21  ;;  %p2742_p9 = scmp.lt.u32.totalorder %s3668_s11, %s3721_s10 }
 0x7c8   : > { %p2743_p10 = scmp.lt.u32.totalorder %s2741_s29, %s2737_s21  ;;  %p2745_p12 = scmp.lt.u32.totalorder %s2737_s21, %s3668_s11 }
 0x7c9   : > { %p2739_p7 = pnand %p2738_p4, %p2882_p5 }
 0x7ca   : > { %p2744_p11 = por %p2743_p10, %p2742_p9 }
 0x7cb   : > { %p2740_p8 = pneg %p2739_p7 }
 0x7cc   : > { %p2746_p13 = por %p2745_p12, %p2744_p11 }
 0x7ce   : > { %p2747_p0 = pnand %p2746_p13, %p2740_p8 }
 0x7d0   : > { %2750 = shalt.err (!%p2747_p0)
}
 0x7d1   : > { %2614 = dma.vmem_to_hbm [thread:$0]  (%p2882_p5), %s3670_s28, 128, %s3668_s11, %s2090_s12  }
 0x7d2 PF: > { %p2620_p1 = scmp.ge.s32.totalorder %s2785_s16, 2  ;;  %s2115_s18 = sand.u32 1, %s2773_s13  }
 0x7d3   : > { %s2116_s20 = scalar_lea.sflag [#allocation3], %s2115_s18 }
 0x7d4   : > { %p2617_p2 = pnand %p2620_p1, %p2886_p6 }
 0x7d6   : > { %2768 = dma.done.wait (!%p2617_p2), %s2116_s20, 128  }
 0x7d7   : > { %2770 = vsyncadd (!%p2617_p2), %s2116_s20, 4294967168  ;;  %p20_p3 = scmp.ge.s32.totalorder %s2869_s19, 4   ;;  %s3724_s13 = smov %s2777_s14 }
 0x7d8   : > { %s3725_s14 = smov %s2781_s15  ;;  %s3726_s15 = smov %s2880_s22 }
 0x7d9   : > { %s3727_s16 = smov %s2869_s19  ;;  %22 = sbr.rel (!%p20_p3) target bundleno = 3 (0x3), region = 98 }
 0x7e0   :  { %2121 = vsyncpa [#allocation3], 1 }
 0x7e1   :  { %2123 = vsyncpa [#allocation3 + $0x1], 1 }

</bundles_post_ra>
